<compile_context>
chip_gen: v7x
topology: tpu7x:2x2x1
jax: 0.10.0
libtpu: 0.0.40
codegen_flags: <defaults>
</compile_context>

<pallas_src>
import functools

import jax
import jax.numpy as jnp
from jax.experimental import pallas as pl
from jax.experimental.pallas import tpu as pltpu


# Set to jnp.bfloat16 on v6e/v7x to cut recurrent MXU latency ~3x (keep c/acc
# in f32); kept f32 here for bit-level parity with the PyTorch reference.
RECURRENT_MATMUL_DTYPE = jnp.float32


# ----------------------------------------------------------------------------
# Fused forward kernel
# ----------------------------------------------------------------------------
def _make_forward_kernel(*, T_obs, P, B, H, L, inp, rec_dtype):
    """Builds the fused DoubleLSTMPure forward kernel (all sizes static)."""
    FourH = 4 * H
    P2 = P - 1

    def _combine(sg, c_prev):
        # sg: sigmoid of gate pre-activations whose g-gate columns were
        # pre-scaled by 2 wrapper-side, so tanh(g_pre) == 2*sg_g - 1.
        i_g = sg[:, 0 * H:1 * H]
        f_g = sg[:, 1 * H:2 * H]
        g_g = 2.0 * sg[:, 2 * H:3 * H] - 1.0
        o_g = sg[:, 3 * H:4 * H]
        c_new = f_g * c_prev + i_g * g_g
        h_new = o_g * jnp.tanh(c_new)
        return h_new, c_new

    def kernel(xobs_ref, fb_ref, mats_ref, dec_ref, pred_ref):
        xobs = xobs_ref[...]                                    # ((T+1)*B, 2)
        fb = fb_ref[...]                                        # (2+2L, 4H)
        x2d = xobs[0:T_obs * B, :]                              # raw obs_vel
        obs_last = xobs[T_obs * B:(T_obs + 1) * B, :]           # (B, 2)
        W_fold = fb[0:inp, :]                                   # (inp, 4H)
        b_fold = fb[inp:inp + 1, :]                             # (1, 4H)

        # normalize + encoder + LSTM1 layer-0 input projection: ONE matmul
        gx0_all = (jnp.dot(x2d, W_fold, preferred_element_type=jnp.float32)
                   + b_fold)                                    # (T*B, 4H)
        gx0 = [gx0_all[t * B:(t + 1) * B, :] for t in range(T_obs)]

        zeros = jnp.zeros((B, H), jnp.float32)

        if L == 2:
            # ------------- wavefront schedule over the two layers -----------
            # wavefront step s: layer0 does timestep s, layer1 does s-1.
            # One fused MXU dot per step:
            #   [h0 ; h1] (2B,H) @ [Whh_l0 | Wih_l1 | Whh_l1] (H,12H)
            # and one shared sigmoid pass over (2B, 4H).
            W1 = jnp.concatenate(
                [mats_ref[0], mats_ref[L], mats_ref[1]], axis=1).astype(rec_dtype)
            b1_l1 = fb[inp + 1:inp + 2, :]

            # s = 0: layer0 only; zero initial state -> recurrent dot vanishes
            h0, c0 = _combine(jax.nn.sigmoid(gx0[0]), zeros)
            hcat = jnp.concatenate([h0, zeros], axis=0)         # (2B, H)
            ccat = jnp.concatenate([c0, zeros], axis=0)

            for s in range(1, T_obs):                           # dual steps
                r = jnp.dot(hcat.astype(rec_dtype), W1,
                            preferred_element_type=jnp.float32)  # (2B, 12H)
                g0 = gx0[s] + r[0:B, 0:FourH]
                g1 = (r[0:B, FourH:2 * FourH]
                      + r[B:2 * B, 2 * FourH:3 * FourH] + b1_l1)
                sg = jax.nn.sigmoid(jnp.concatenate([g0, g1], axis=0))
                hcat, ccat = _combine(sg, ccat)

            # s = T_obs: drain layer1 for its last timestep
            r = jnp.dot(hcat.astype(rec_dtype), W1,
                        preferred_element_type=jnp.float32)
            g1 = (r[0:B, FourH:2 * FourH]
                  + r[B:2 * B, 2 * FourH:3 * FourH] + b1_l1)
            h1_f, c1_f = _combine(jax.nn.sigmoid(g1), ccat[B:2 * B, :])
            h0_f, c0_f = hcat[0:B, :], ccat[0:B, :]
            pred_feat = h1_f                                    # (B, H)

            if P2 > 0:
                W2 = jnp.concatenate(
                    [mats_ref[2 * L - 1], mats_ref[3 * L], mats_ref[2 * L]],
                    axis=1).astype(rec_dtype)
                b2_l0 = fb[inp + L:inp + L + 1, :]
                b2_l1 = fb[inp + L + 1:inp + L + 2, :]
                # layer0 input is pred_feat at every step -> project once
                gx_c = (jnp.dot(pred_feat, mats_ref[3 * L - 1],
                                preferred_element_type=jnp.float32) + b2_l0)

                hcat = jnp.concatenate([h0_f, h1_f], axis=0)
                ccat = jnp.concatenate([c0_f, c1_f], axis=0)
                h_top = []

                # s = 0: layer0 only (state comes from LSTM1, not zero)
                r = jnp.dot(hcat.astype(rec_dtype), W2,
                            preferred_element_type=jnp.float32)
                h0n, c0n = _combine(jax.nn.sigmoid(gx_c + r[0:B, 0:FourH]),
                                    ccat[0:B, :])
                hcat = jnp.concatenate([h0n, hcat[B:2 * B, :]], axis=0)
                ccat = jnp.concatenate([c0n, ccat[B:2 * B, :]], axis=0)

                for s in range(1, P2):                          # dual steps
                    r = jnp.dot(hcat.astype(rec_dtype), W2,
                                preferred_element_type=jnp.float32)
                    g0 = gx_c + r[0:B, 0:FourH]
                    g1 = (r[0:B, FourH:2 * FourH]
                          + r[B:2 * B, 2 * FourH:3 * FourH] + b2_l1)
                    sg = jax.nn.sigmoid(jnp.concatenate([g0, g1], axis=0))
                    hcat, ccat = _combine(sg, ccat)
                    h_top.append(hcat[B:2 * B, :])

                # s = P2: drain layer1 for its last timestep
                r = jnp.dot(hcat.astype(rec_dtype), W2,
                            preferred_element_type=jnp.float32)
                g1 = (r[0:B, FourH:2 * FourH]
                      + r[B:2 * B, 2 * FourH:3 * FourH] + b2_l1)
                h1n, _ = _combine(jax.nn.sigmoid(g1), ccat[B:2 * B, :])
                h_top.append(h1n)

                feat = jnp.concatenate([pred_feat] + h_top, axis=0)  # (P*B, H)
            else:
                feat = pred_feat
        else:
            # ------------- generic sequential fallback (any L) --------------
            h_fin, c_fin = [], []
            seq = None
            for l in range(L):
                w_hh = mats_ref[l]
                if l == 0:
                    gx = gx0
                else:
                    xin = jnp.concatenate(seq, axis=0)
                    b_l = fb[inp + l:inp + l + 1, :]
                    g_all = (jnp.dot(xin, mats_ref[L + l - 1],
                                     preferred_element_type=jnp.float32) + b_l)
                    gx = [g_all[t * B:(t + 1) * B, :] for t in range(T_obs)]
                h, c = zeros, zeros
                seq = []
                for t in range(T_obs):
                    g = gx[t] + jnp.dot(h, w_hh,
                                        preferred_element_type=jnp.float32)
                    h, c = _combine(jax.nn.sigmoid(g), c)
                    seq.append(h)
                h_fin.append(h)
                c_fin.append(c)
            pred_feat = seq[-1]

            if P2 > 0:
                for l in range(L):
                    w_hh = mats_ref[2 * L - 1 + l]
                    w_ih = mats_ref[3 * L - 1 + l]
                    b_l = fb[inp + L + l:inp + L + l + 1, :]
                    h, c = h_fin[l], c_fin[l]
                    if l == 0:
                        gx = [jnp.dot(pred_feat, w_ih,
                                      preferred_element_type=jnp.float32) + b_l
                              ] * P2
                    else:
                        xin = jnp.concatenate(seq, axis=0)
                        g_all = (jnp.dot(xin, w_ih,
                                         preferred_element_type=jnp.float32)
                                 + b_l)
                        gx = [g_all[t * B:(t + 1) * B, :] for t in range(P2)]
                    seq = []
                    for t in range(P2):
                        g = gx[t] + jnp.dot(h, w_hh,
                                            preferred_element_type=jnp.float32)
                        h, c = _combine(jax.nn.sigmoid(g), c)
                        seq.append(h)
                feat = jnp.concatenate([pred_feat] + seq, axis=0)
            else:
                feat = pred_feat

        # ---- decoder (std/mean folded in) + cumsum + single slab store ----
        dec = dec_ref[...]                                       # (H+1, 2)
        inc = (jnp.dot(feat, dec[0:H, :],
                       preferred_element_type=jnp.float32) + dec[H:H + 1, :])
        acc = obs_last + inc[0:B, :]
        rows = [acc]
        for t in range(1, P):
            acc = acc + inc[t * B:(t + 1) * B, :]
            rows.append(acc)
        pred_ref[...] = jnp.concatenate(rows, axis=0)            # one store

    return kernel


# ----------------------------------------------------------------------------
# DoubleLSTMPure forward (eval-mode path)
# ----------------------------------------------------------------------------
def double_lstm_pure_forward(params, obs, obs_vel, mean, std, pred_len):
    """Mirrors DoubleLSTMPure.forward (self.training == False branch)."""
    B, T_obs, inp_size = obs_vel.shape
    H = params["enc_w_t"].shape[1]
    L = params["lstm1"]["w_ih"].shape[0]
    P = int(pred_len)

    f32 = jnp.float32
    mean2 = mean.reshape(1, 2).astype(f32)
    std2 = std.reshape(1, 2).astype(f32)

    # --- single-sigmoid trick: double the g-gate columns of every gate map ---
    def gscale(w):
        return w.at[..., 2 * H:3 * H].multiply(2.0)

    w_ih1 = gscale(params["lstm1"]["w_ih"])
    w_hh1 = gscale(params["lstm1"]["w_hh"])
    b1 = gscale(params["lstm1"]["b"])
    w_ih2 = gscale(params["lstm2"]["w_ih"])
    w_hh2 = gscale(params["lstm2"]["w_hh"])
    b2 = gscale(params["lstm2"]["b"])

    # --- fold normalize + encoder + LSTM1 layer-0 input projection ---
    enc_w_s = params["enc_w_t"] * (1.0 / std2).reshape(inp_size, 1)
    enc_b_eff = params["enc_b"] - (mean2 / std2) @ params["enc_w_t"]
    W_fold = enc_w_s @ w_ih1[0]                                  # (inp, 4H)
    b_fold = enc_b_eff @ w_ih1[0] + b1[0]                        # (1, 4H)

    # --- fold std/mean into the decoder (only first 2 channels are used) ---
    dec_w2 = params["dec_w_t"][:, :2] * std2                     # (H, 2)
    dec_b2 = params["dec_b"][:, :2] * std2 + mean2               # (1, 2)

    # --- pack kernel inputs (4 arrays instead of 14 -> fewer entry DMAs) ---
    x2d = jnp.transpose(obs_vel, (1, 0, 2)).reshape(T_obs * B, inp_size)
    obs_last = obs[:, -1, :].astype(f32)
    xobs = jnp.concatenate([x2d.astype(f32), obs_last], axis=0)  # ((T+1)*B, 2)

    fb = jnp.concatenate(
        [W_fold, b_fold]
        + [b1[l] for l in range(1, L)]
        + [b2[l] for l in range(L)], axis=0)                     # (2+2L, 4H)

    mats = jnp.concatenate(
        [w_hh1] + ([w_ih1[1:]] if L > 1 else []) + [w_hh2, w_ih2],
        axis=0)                                                  # (4L-1, H, 4H)

    dec = jnp.concatenate([dec_w2, dec_b2], axis=0)              # (H+1, 2)

    kernel = _make_forward_kernel(T_obs=T_obs, P=P, B=B, H=H, L=L,
                                  inp=inp_size,
                                  rec_dtype=RECURRENT_MATMUL_DTYPE)

    pred2d = pl.pallas_call(
        kernel,
        out_shape=jax.ShapeDtypeStruct((P * B, 2), jnp.float32),
        in_specs=[pl.BlockSpec(memory_space=pltpu.MemorySpace.VMEM)] * 4,
        out_specs=pl.BlockSpec(memory_space=pltpu.MemorySpace.VMEM),
    )(xobs, fb, mats, dec)

    return jnp.transpose(pred2d.reshape(P, B, 2), (1, 0, 2))     # (B, P, 2)


# ----------------------------------------------------------------------------
# Pure-JAX reference (lax.scan) for validation
# ----------------------------------------------------------------------------
def _lstm_ref(x_btd, lstm_params, h0_lbh, c0_lbh):
    w_ih_all = lstm_params["w_ih"]
    w_hh_all = lstm_params["w_hh"]
    b_all = lstm_params["b"]
    L = w_ih_all.shape[0]
    x = x_btd
    hTs, cTs = [], []
    for l in range(L):
        wi, wh, bb = w_ih_all[l], w_hh_all[l], b_all[l]

        def step(carry, xt, wi=wi, wh=wh, bb=bb):
            h, c = carry
            gates = xt @ wi + h @ wh + bb
            i, f, g, o = jnp.split(gates, 4, axis=-1)
            c = jax.nn.sigmoid(f) * c + jax.nn.sigmoid(i) * jnp.tanh(g)
            h = jax.nn.sigmoid(o) * jnp.tanh(c)
            return (h, c), h

        (hT, cT), ys = jax.lax.scan(step, (h0_lbh[l], c0_lbh[l]),
                                    jnp.transpose(x, (1, 0, 2)))
        x = jnp.transpose(ys, (1, 0, 2))
        hTs.append(hT)
        cTs.append(cT)
    return x, jnp.stack(hTs), jnp.stack(cTs)


def _forward_ref(params, obs, obs_vel, mean, std, pred_len):
    B, T_obs, _ = obs_vel.shape
    H = params["enc_w_t"].shape[1]
    L = params["lstm1"]["w_ih"].shape[0]
    inp = (obs_vel - mean) / std
    emb = inp @ params["enc_w_t"] + params["enc_b"]
    h0 = jnp.zeros((L, B, H), jnp.float32)
    c0 = jnp.zeros((L, B, H), jnp.float32)
    out1, obsH, obsC = _lstm_ref(emb, params["lstm1"], h0, c0)
    pred_feat = out1[:, -1:, :]
    inner_inp = jnp.tile(pred_feat, (1, pred_len - 1, 1))
    out2, _, _ = _lstm_ref(inner_inp, params["lstm2"], obsH, obsC)
    feat = jnp.concatenate([pred_feat, out2], axis=1)
    out_vel = feat @ params["dec_w_t"] + params["dec_b"]
    pred = out_vel[:, :, :2] * std + mean
    return jnp.cumsum(pred, axis=1) + obs[:, -1:, :]


# ----------------------------------------------------------------------------
# Deterministic parameter construction (arrays only -> jit-safe pytree)
# ----------------------------------------------------------------------------
def make_params(key, inp_size, out_size, num_layers, hidden):
    def xavier(k, shape):
        fan_in, fan_out = shape[-2], shape[-1]
        lim = (6.0 / (fan_in + fan_out)) ** 0.5
        return jax.random.uniform(k, shape, jnp.float32, -lim, lim)

    keys = iter(jax.random.split(key, 2 + 8 * num_layers))
    params = {}
    # encoder / decoder (stored pre-transposed: (Din, Dout)), biases as rows
    params["enc_w_t"] = xavier(next(keys), (inp_size, hidden))
    params["enc_b"] = jnp.zeros((1, hidden), jnp.float32)
    params["dec_w_t"] = xavier(next(keys), (hidden, out_size))
    params["dec_b"] = jnp.zeros((1, out_size), jnp.float32)

    def make_lstm():
        w_ih, w_hh, b = [], [], []
        for _ in range(num_layers):
            w_ih.append(xavier(next(keys), (hidden, 4 * hidden)))
            w_hh.append(xavier(next(keys), (hidden, 4 * hidden)))
            b_ih = 0.01 * jax.random.normal(next(keys), (4 * hidden,), jnp.float32)
            b_hh = 0.01 * jax.random.normal(next(keys), (4 * hidden,), jnp.float32)
            b.append((b_ih + b_hh).reshape(1, 4 * hidden))
        return {"w_ih": jnp.stack(w_ih),      # (L, H, 4H)
                "w_hh": jnp.stack(w_hh),      # (L, H, 4H)
                "b": jnp.stack(b)}            # (L, 1, 4H)

    params["lstm1"] = make_lstm()
    params["lstm2"] = make_lstm()
    return params


# ----------------------------------------------------------------------------
# Main
# ----------------------------------------------------------------------------
if __name__ == "__main__":
    B = 2            # batch
    OBS_LEN = 8      # observed sequence length
    PRED_LEN = 8     # params.dataset.pred_len
    INP_SIZE = 2     # velocity (x, y)
    OUT_SIZE = 2
    HIDDEN = 32
    NUM_LAYERS = 2

    key = jax.random.PRNGKey(0)
    k_p, k_obs, k_vel = jax.random.split(key, 3)

    params = make_params(k_p, INP_SIZE, OUT_SIZE, NUM_LAYERS, HIDDEN)

    obs = jax.random.normal(k_obs, (B, OBS_LEN, 2), jnp.float32)
    obs_vel = jax.random.normal(k_vel, (B, OBS_LEN, 2), jnp.float32)
    mean = jnp.array([0.1, -0.2], jnp.float32)
    std = jnp.array([0.5, 0.8], jnp.float32)

    fwd = jax.jit(functools.partial(double_lstm_pure_forward, pred_len=PRED_LEN))
    pred = fwd(params, obs, obs_vel, mean, std)
    pred = jax.block_until_ready(pred)

    # sanity check against a pure-JAX reference (weight folding + the
    # tanh(x) = 2*sigmoid(2x)-1 identity change f32 rounding slightly).
    pred_ref = _forward_ref(params, obs, obs_vel, mean, std, PRED_LEN)
    assert pred.shape == (B, PRED_LEN, 2)
    assert jnp.allclose(pred, pred_ref, rtol=1e-3, atol=1e-3), "mismatch vs reference"

    print("KERNEL_OK")
</pallas_src>

<mosaic_0001>
module attributes {stable_mosaic.version = 11 : i64} {
  func.func @kernel(%arg0: memref<18x2xf32, #tpu.memory_space<vmem>>, %arg1: memref<6x128xf32, #tpu.memory_space<vmem>>, %arg2: memref<7x32x128xf32, #tpu.memory_space<vmem>>, %arg3: memref<33x2xf32, #tpu.memory_space<vmem>>, %arg4: memref<16x2xf32, #tpu.memory_space<vmem>>) attributes {dimension_semantics = [], scalar_prefetch = 0 : i64, scratch_operands = 0 : i64, tpu.core_type = #tpu.core_type<tc>} {
    %c0 = arith.constant 0 : index
    %c0_0 = arith.constant 0 : index
    %0 = vector.load %arg0[%c0, %c0_0] : memref<18x2xf32, #tpu.memory_space<vmem>>, vector<18x2xf32>
    %c0_1 = arith.constant 0 : index
    %c0_2 = arith.constant 0 : index
    %1 = vector.load %arg1[%c0_1, %c0_2] : memref<6x128xf32, #tpu.memory_space<vmem>>, vector<6x128xf32>
    %2 = vector.extract_strided_slice %0 {offsets = [0, 0], sizes = [16, 2], strides = [1, 1]} : vector<18x2xf32> to vector<16x2xf32>
    %3 = vector.extract_strided_slice %0 {offsets = [16, 0], sizes = [2, 2], strides = [1, 1]} : vector<18x2xf32> to vector<2x2xf32>
    %4 = vector.extract_strided_slice %1 {offsets = [0, 0], sizes = [2, 128], strides = [1, 1]} : vector<6x128xf32> to vector<2x128xf32>
    %5 = vector.extract_strided_slice %1 {offsets = [2, 0], sizes = [1, 128], strides = [1, 1]} : vector<6x128xf32> to vector<1x128xf32>
    %cst = arith.constant dense<0.000000e+00> : vector<16x128xf32>
    %6 = tpu.matmul %2, %4, %cst {dimension_numbers = #tpu.dot_dimension_numbers<[1], [0], [0], [1], [0, 0, 1, 1], [], []>} : vector<16x2xf32>, vector<2x128xf32>, vector<16x128xf32> -> vector<16x128xf32>
    %7 = vector.broadcast %5 : vector<1x128xf32> to vector<16x128xf32>
    %8 = arith.addf %6, %7 : vector<16x128xf32>
    %9 = vector.extract_strided_slice %8 {offsets = [0, 0], sizes = [2, 128], strides = [1, 1]} : vector<16x128xf32> to vector<2x128xf32>
    %10 = vector.extract_strided_slice %8 {offsets = [2, 0], sizes = [2, 128], strides = [1, 1]} : vector<16x128xf32> to vector<2x128xf32>
    %11 = vector.extract_strided_slice %8 {offsets = [4, 0], sizes = [2, 128], strides = [1, 1]} : vector<16x128xf32> to vector<2x128xf32>
    %12 = vector.extract_strided_slice %8 {offsets = [6, 0], sizes = [2, 128], strides = [1, 1]} : vector<16x128xf32> to vector<2x128xf32>
    %13 = vector.extract_strided_slice %8 {offsets = [8, 0], sizes = [2, 128], strides = [1, 1]} : vector<16x128xf32> to vector<2x128xf32>
    %14 = vector.extract_strided_slice %8 {offsets = [10, 0], sizes = [2, 128], strides = [1, 1]} : vector<16x128xf32> to vector<2x128xf32>
    %15 = vector.extract_strided_slice %8 {offsets = [12, 0], sizes = [2, 128], strides = [1, 1]} : vector<16x128xf32> to vector<2x128xf32>
    %16 = vector.extract_strided_slice %8 {offsets = [14, 0], sizes = [2, 128], strides = [1, 1]} : vector<16x128xf32> to vector<2x128xf32>
    %cst_3 = arith.constant 0.000000e+00 : f32
    %17 = vector.broadcast %cst_3 : f32 to vector<2x32xf32>
    %c0_4 = arith.constant 0 : index
    %c0_5 = arith.constant 0 : index
    %c0_6 = arith.constant 0 : index
    %18 = vector.load %arg2[%c0_4, %c0_5, %c0_6] : memref<7x32x128xf32, #tpu.memory_space<vmem>>, vector<1x32x128xf32>
    %19 = vector.shape_cast %18 : vector<1x32x128xf32> to vector<32x128xf32>
    %c2 = arith.constant 2 : index
    %c0_7 = arith.constant 0 : index
    %c0_8 = arith.constant 0 : index
    %20 = vector.load %arg2[%c2, %c0_7, %c0_8] : memref<7x32x128xf32, #tpu.memory_space<vmem>>, vector<1x32x128xf32>
    %21 = vector.shape_cast %20 : vector<1x32x128xf32> to vector<32x128xf32>
    %c1 = arith.constant 1 : index
    %c0_9 = arith.constant 0 : index
    %c0_10 = arith.constant 0 : index
    %22 = vector.load %arg2[%c1, %c0_9, %c0_10] : memref<7x32x128xf32, #tpu.memory_space<vmem>>, vector<1x32x128xf32>
    %23 = vector.shape_cast %22 : vector<1x32x128xf32> to vector<32x128xf32>
    %24 = tpu.concatenate %19, %21, %23 in 1 : vector<32x128xf32>, vector<32x128xf32>, vector<32x128xf32> -> vector<32x384xf32>
    %25 = vector.extract_strided_slice %1 {offsets = [3, 0], sizes = [1, 128], strides = [1, 1]} : vector<6x128xf32> to vector<1x128xf32>
    %26 = arith.negf %9 : vector<2x128xf32>
    %27 = math.exp %26 : vector<2x128xf32>
    %cst_11 = arith.constant 1.000000e+00 : f32
    %28 = vector.broadcast %cst_11 : f32 to vector<2x128xf32>
    %29 = arith.addf %28, %27 : vector<2x128xf32>
    %30 = arith.divf %28, %29 : vector<2x128xf32>
    %31 = vector.extract_strided_slice %30 {offsets = [0, 0], sizes = [2, 32], strides = [1, 1]} : vector<2x128xf32> to vector<2x32xf32>
    %32 = vector.extract_strided_slice %30 {offsets = [0, 32], sizes = [2, 32], strides = [1, 1]} : vector<2x128xf32> to vector<2x32xf32>
    %33 = vector.extract_strided_slice %30 {offsets = [0, 64], sizes = [2, 32], strides = [1, 1]} : vector<2x128xf32> to vector<2x32xf32>
    %cst_12 = arith.constant 2.000000e+00 : f32
    %34 = vector.broadcast %cst_12 : f32 to vector<2x32xf32>
    %35 = arith.mulf %34, %33 : vector<2x32xf32>
    %cst_13 = arith.constant 1.000000e+00 : f32
    %36 = vector.broadcast %cst_13 : f32 to vector<2x32xf32>
    %37 = arith.subf %35, %36 : vector<2x32xf32>
    %38 = vector.extract_strided_slice %30 {offsets = [0, 96], sizes = [2, 32], strides = [1, 1]} : vector<2x128xf32> to vector<2x32xf32>
    %39 = arith.mulf %32, %17 : vector<2x32xf32>
    %40 = arith.mulf %31, %37 : vector<2x32xf32>
    %41 = arith.addf %39, %40 : vector<2x32xf32>
    %42 = math.tanh %41 : vector<2x32xf32>
    %43 = arith.mulf %38, %42 : vector<2x32xf32>
    %44 = tpu.concatenate %43, %17 in 0 : vector<2x32xf32>, vector<2x32xf32> -> vector<4x32xf32>
    %45 = tpu.concatenate %41, %17 in 0 : vector<2x32xf32>, vector<2x32xf32> -> vector<4x32xf32>
    %cst_14 = arith.constant dense<0.000000e+00> : vector<4x384xf32>
    %46 = tpu.matmul %44, %24, %cst_14 {dimension_numbers = #tpu.dot_dimension_numbers<[1], [0], [0], [1], [0, 0, 1, 1], [], []>} : vector<4x32xf32>, vector<32x384xf32>, vector<4x384xf32> -> vector<4x384xf32>
    %47 = vector.extract_strided_slice %46 {offsets = [0, 0], sizes = [2, 128], strides = [1, 1]} : vector<4x384xf32> to vector<2x128xf32>
    %48 = arith.addf %10, %47 : vector<2x128xf32>
    %49 = vector.extract_strided_slice %46 {offsets = [0, 128], sizes = [2, 128], strides = [1, 1]} : vector<4x384xf32> to vector<2x128xf32>
    %50 = vector.extract_strided_slice %46 {offsets = [2, 256], sizes = [2, 128], strides = [1, 1]} : vector<4x384xf32> to vector<2x128xf32>
    %51 = arith.addf %49, %50 : vector<2x128xf32>
    %52 = vector.broadcast %25 : vector<1x128xf32> to vector<2x128xf32>
    %53 = arith.addf %51, %52 : vector<2x128xf32>
    %54 = tpu.concatenate %48, %53 in 0 : vector<2x128xf32>, vector<2x128xf32> -> vector<4x128xf32>
    %55 = arith.negf %54 : vector<4x128xf32>
    %56 = math.exp %55 : vector<4x128xf32>
    %cst_15 = arith.constant 1.000000e+00 : f32
    %57 = vector.broadcast %cst_15 : f32 to vector<4x128xf32>
    %58 = arith.addf %57, %56 : vector<4x128xf32>
    %59 = arith.divf %57, %58 : vector<4x128xf32>
    %60 = vector.extract_strided_slice %59 {offsets = [0, 0], sizes = [4, 32], strides = [1, 1]} : vector<4x128xf32> to vector<4x32xf32>
    %61 = vector.extract_strided_slice %59 {offsets = [0, 32], sizes = [4, 32], strides = [1, 1]} : vector<4x128xf32> to vector<4x32xf32>
    %62 = vector.extract_strided_slice %59 {offsets = [0, 64], sizes = [4, 32], strides = [1, 1]} : vector<4x128xf32> to vector<4x32xf32>
    %cst_16 = arith.constant 2.000000e+00 : f32
    %63 = vector.broadcast %cst_16 : f32 to vector<4x32xf32>
    %64 = arith.mulf %63, %62 : vector<4x32xf32>
    %cst_17 = arith.constant 1.000000e+00 : f32
    %65 = vector.broadcast %cst_17 : f32 to vector<4x32xf32>
    %66 = arith.subf %64, %65 : vector<4x32xf32>
    %67 = vector.extract_strided_slice %59 {offsets = [0, 96], sizes = [4, 32], strides = [1, 1]} : vector<4x128xf32> to vector<4x32xf32>
    %68 = arith.mulf %61, %45 : vector<4x32xf32>
    %69 = arith.mulf %60, %66 : vector<4x32xf32>
    %70 = arith.addf %68, %69 : vector<4x32xf32>
    %71 = math.tanh %70 : vector<4x32xf32>
    %72 = arith.mulf %67, %71 : vector<4x32xf32>
    %cst_18 = arith.constant dense<0.000000e+00> : vector<4x384xf32>
    %73 = tpu.matmul %72, %24, %cst_18 {dimension_numbers = #tpu.dot_dimension_numbers<[1], [0], [0], [1], [0, 0, 1, 1], [], []>} : vector<4x32xf32>, vector<32x384xf32>, vector<4x384xf32> -> vector<4x384xf32>
    %74 = vector.extract_strided_slice %73 {offsets = [0, 0], sizes = [2, 128], strides = [1, 1]} : vector<4x384xf32> to vector<2x128xf32>
    %75 = arith.addf %11, %74 : vector<2x128xf32>
    %76 = vector.extract_strided_slice %73 {offsets = [0, 128], sizes = [2, 128], strides = [1, 1]} : vector<4x384xf32> to vector<2x128xf32>
    %77 = vector.extract_strided_slice %73 {offsets = [2, 256], sizes = [2, 128], strides = [1, 1]} : vector<4x384xf32> to vector<2x128xf32>
    %78 = arith.addf %76, %77 : vector<2x128xf32>
    %79 = vector.broadcast %25 : vector<1x128xf32> to vector<2x128xf32>
    %80 = arith.addf %78, %79 : vector<2x128xf32>
    %81 = tpu.concatenate %75, %80 in 0 : vector<2x128xf32>, vector<2x128xf32> -> vector<4x128xf32>
    %82 = arith.negf %81 : vector<4x128xf32>
    %83 = math.exp %82 : vector<4x128xf32>
    %cst_19 = arith.constant 1.000000e+00 : f32
    %84 = vector.broadcast %cst_19 : f32 to vector<4x128xf32>
    %85 = arith.addf %84, %83 : vector<4x128xf32>
    %86 = arith.divf %84, %85 : vector<4x128xf32>
    %87 = vector.extract_strided_slice %86 {offsets = [0, 0], sizes = [4, 32], strides = [1, 1]} : vector<4x128xf32> to vector<4x32xf32>
    %88 = vector.extract_strided_slice %86 {offsets = [0, 32], sizes = [4, 32], strides = [1, 1]} : vector<4x128xf32> to vector<4x32xf32>
    %89 = vector.extract_strided_slice %86 {offsets = [0, 64], sizes = [4, 32], strides = [1, 1]} : vector<4x128xf32> to vector<4x32xf32>
    %cst_20 = arith.constant 2.000000e+00 : f32
    %90 = vector.broadcast %cst_20 : f32 to vector<4x32xf32>
    %91 = arith.mulf %90, %89 : vector<4x32xf32>
    %cst_21 = arith.constant 1.000000e+00 : f32
    %92 = vector.broadcast %cst_21 : f32 to vector<4x32xf32>
    %93 = arith.subf %91, %92 : vector<4x32xf32>
    %94 = vector.extract_strided_slice %86 {offsets = [0, 96], sizes = [4, 32], strides = [1, 1]} : vector<4x128xf32> to vector<4x32xf32>
    %95 = arith.mulf %88, %70 : vector<4x32xf32>
    %96 = arith.mulf %87, %93 : vector<4x32xf32>
    %97 = arith.addf %95, %96 : vector<4x32xf32>
    %98 = math.tanh %97 : vector<4x32xf32>
    %99 = arith.mulf %94, %98 : vector<4x32xf32>
    %cst_22 = arith.constant dense<0.000000e+00> : vector<4x384xf32>
    %100 = tpu.matmul %99, %24, %cst_22 {dimension_numbers = #tpu.dot_dimension_numbers<[1], [0], [0], [1], [0, 0, 1, 1], [], []>} : vector<4x32xf32>, vector<32x384xf32>, vector<4x384xf32> -> vector<4x384xf32>
    %101 = vector.extract_strided_slice %100 {offsets = [0, 0], sizes = [2, 128], strides = [1, 1]} : vector<4x384xf32> to vector<2x128xf32>
    %102 = arith.addf %12, %101 : vector<2x128xf32>
    %103 = vector.extract_strided_slice %100 {offsets = [0, 128], sizes = [2, 128], strides = [1, 1]} : vector<4x384xf32> to vector<2x128xf32>
    %104 = vector.extract_strided_slice %100 {offsets = [2, 256], sizes = [2, 128], strides = [1, 1]} : vector<4x384xf32> to vector<2x128xf32>
    %105 = arith.addf %103, %104 : vector<2x128xf32>
    %106 = vector.broadcast %25 : vector<1x128xf32> to vector<2x128xf32>
    %107 = arith.addf %105, %106 : vector<2x128xf32>
    %108 = tpu.concatenate %102, %107 in 0 : vector<2x128xf32>, vector<2x128xf32> -> vector<4x128xf32>
    %109 = arith.negf %108 : vector<4x128xf32>
    %110 = math.exp %109 : vector<4x128xf32>
    %cst_23 = arith.constant 1.000000e+00 : f32
    %111 = vector.broadcast %cst_23 : f32 to vector<4x128xf32>
    %112 = arith.addf %111, %110 : vector<4x128xf32>
    %113 = arith.divf %111, %112 : vector<4x128xf32>
    %114 = vector.extract_strided_slice %113 {offsets = [0, 0], sizes = [4, 32], strides = [1, 1]} : vector<4x128xf32> to vector<4x32xf32>
    %115 = vector.extract_strided_slice %113 {offsets = [0, 32], sizes = [4, 32], strides = [1, 1]} : vector<4x128xf32> to vector<4x32xf32>
    %116 = vector.extract_strided_slice %113 {offsets = [0, 64], sizes = [4, 32], strides = [1, 1]} : vector<4x128xf32> to vector<4x32xf32>
    %cst_24 = arith.constant 2.000000e+00 : f32
    %117 = vector.broadcast %cst_24 : f32 to vector<4x32xf32>
    %118 = arith.mulf %117, %116 : vector<4x32xf32>
    %cst_25 = arith.constant 1.000000e+00 : f32
    %119 = vector.broadcast %cst_25 : f32 to vector<4x32xf32>
    %120 = arith.subf %118, %119 : vector<4x32xf32>
    %121 = vector.extract_strided_slice %113 {offsets = [0, 96], sizes = [4, 32], strides = [1, 1]} : vector<4x128xf32> to vector<4x32xf32>
    %122 = arith.mulf %115, %97 : vector<4x32xf32>
    %123 = arith.mulf %114, %120 : vector<4x32xf32>
    %124 = arith.addf %122, %123 : vector<4x32xf32>
    %125 = math.tanh %124 : vector<4x32xf32>
    %126 = arith.mulf %121, %125 : vector<4x32xf32>
    %cst_26 = arith.constant dense<0.000000e+00> : vector<4x384xf32>
    %127 = tpu.matmul %126, %24, %cst_26 {dimension_numbers = #tpu.dot_dimension_numbers<[1], [0], [0], [1], [0, 0, 1, 1], [], []>} : vector<4x32xf32>, vector<32x384xf32>, vector<4x384xf32> -> vector<4x384xf32>
    %128 = vector.extract_strided_slice %127 {offsets = [0, 0], sizes = [2, 128], strides = [1, 1]} : vector<4x384xf32> to vector<2x128xf32>
    %129 = arith.addf %13, %128 : vector<2x128xf32>
    %130 = vector.extract_strided_slice %127 {offsets = [0, 128], sizes = [2, 128], strides = [1, 1]} : vector<4x384xf32> to vector<2x128xf32>
    %131 = vector.extract_strided_slice %127 {offsets = [2, 256], sizes = [2, 128], strides = [1, 1]} : vector<4x384xf32> to vector<2x128xf32>
    %132 = arith.addf %130, %131 : vector<2x128xf32>
    %133 = vector.broadcast %25 : vector<1x128xf32> to vector<2x128xf32>
    %134 = arith.addf %132, %133 : vector<2x128xf32>
    %135 = tpu.concatenate %129, %134 in 0 : vector<2x128xf32>, vector<2x128xf32> -> vector<4x128xf32>
    %136 = arith.negf %135 : vector<4x128xf32>
    %137 = math.exp %136 : vector<4x128xf32>
    %cst_27 = arith.constant 1.000000e+00 : f32
    %138 = vector.broadcast %cst_27 : f32 to vector<4x128xf32>
    %139 = arith.addf %138, %137 : vector<4x128xf32>
    %140 = arith.divf %138, %139 : vector<4x128xf32>
    %141 = vector.extract_strided_slice %140 {offsets = [0, 0], sizes = [4, 32], strides = [1, 1]} : vector<4x128xf32> to vector<4x32xf32>
    %142 = vector.extract_strided_slice %140 {offsets = [0, 32], sizes = [4, 32], strides = [1, 1]} : vector<4x128xf32> to vector<4x32xf32>
    %143 = vector.extract_strided_slice %140 {offsets = [0, 64], sizes = [4, 32], strides = [1, 1]} : vector<4x128xf32> to vector<4x32xf32>
    %cst_28 = arith.constant 2.000000e+00 : f32
    %144 = vector.broadcast %cst_28 : f32 to vector<4x32xf32>
    %145 = arith.mulf %144, %143 : vector<4x32xf32>
    %cst_29 = arith.constant 1.000000e+00 : f32
    %146 = vector.broadcast %cst_29 : f32 to vector<4x32xf32>
    %147 = arith.subf %145, %146 : vector<4x32xf32>
    %148 = vector.extract_strided_slice %140 {offsets = [0, 96], sizes = [4, 32], strides = [1, 1]} : vector<4x128xf32> to vector<4x32xf32>
    %149 = arith.mulf %142, %124 : vector<4x32xf32>
    %150 = arith.mulf %141, %147 : vector<4x32xf32>
    %151 = arith.addf %149, %150 : vector<4x32xf32>
    %152 = math.tanh %151 : vector<4x32xf32>
    %153 = arith.mulf %148, %152 : vector<4x32xf32>
    %cst_30 = arith.constant dense<0.000000e+00> : vector<4x384xf32>
    %154 = tpu.matmul %153, %24, %cst_30 {dimension_numbers = #tpu.dot_dimension_numbers<[1], [0], [0], [1], [0, 0, 1, 1], [], []>} : vector<4x32xf32>, vector<32x384xf32>, vector<4x384xf32> -> vector<4x384xf32>
    %155 = vector.extract_strided_slice %154 {offsets = [0, 0], sizes = [2, 128], strides = [1, 1]} : vector<4x384xf32> to vector<2x128xf32>
    %156 = arith.addf %14, %155 : vector<2x128xf32>
    %157 = vector.extract_strided_slice %154 {offsets = [0, 128], sizes = [2, 128], strides = [1, 1]} : vector<4x384xf32> to vector<2x128xf32>
    %158 = vector.extract_strided_slice %154 {offsets = [2, 256], sizes = [2, 128], strides = [1, 1]} : vector<4x384xf32> to vector<2x128xf32>
    %159 = arith.addf %157, %158 : vector<2x128xf32>
    %160 = vector.broadcast %25 : vector<1x128xf32> to vector<2x128xf32>
    %161 = arith.addf %159, %160 : vector<2x128xf32>
    %162 = tpu.concatenate %156, %161 in 0 : vector<2x128xf32>, vector<2x128xf32> -> vector<4x128xf32>
    %163 = arith.negf %162 : vector<4x128xf32>
    %164 = math.exp %163 : vector<4x128xf32>
    %cst_31 = arith.constant 1.000000e+00 : f32
    %165 = vector.broadcast %cst_31 : f32 to vector<4x128xf32>
    %166 = arith.addf %165, %164 : vector<4x128xf32>
    %167 = arith.divf %165, %166 : vector<4x128xf32>
    %168 = vector.extract_strided_slice %167 {offsets = [0, 0], sizes = [4, 32], strides = [1, 1]} : vector<4x128xf32> to vector<4x32xf32>
    %169 = vector.extract_strided_slice %167 {offsets = [0, 32], sizes = [4, 32], strides = [1, 1]} : vector<4x128xf32> to vector<4x32xf32>
    %170 = vector.extract_strided_slice %167 {offsets = [0, 64], sizes = [4, 32], strides = [1, 1]} : vector<4x128xf32> to vector<4x32xf32>
    %cst_32 = arith.constant 2.000000e+00 : f32
    %171 = vector.broadcast %cst_32 : f32 to vector<4x32xf32>
    %172 = arith.mulf %171, %170 : vector<4x32xf32>
    %cst_33 = arith.constant 1.000000e+00 : f32
    %173 = vector.broadcast %cst_33 : f32 to vector<4x32xf32>
    %174 = arith.subf %172, %173 : vector<4x32xf32>
    %175 = vector.extract_strided_slice %167 {offsets = [0, 96], sizes = [4, 32], strides = [1, 1]} : vector<4x128xf32> to vector<4x32xf32>
    %176 = arith.mulf %169, %151 : vector<4x32xf32>
    %177 = arith.mulf %168, %174 : vector<4x32xf32>
    %178 = arith.addf %176, %177 : vector<4x32xf32>
    %179 = math.tanh %178 : vector<4x32xf32>
    %180 = arith.mulf %175, %179 : vector<4x32xf32>
    %cst_34 = arith.constant dense<0.000000e+00> : vector<4x384xf32>
    %181 = tpu.matmul %180, %24, %cst_34 {dimension_numbers = #tpu.dot_dimension_numbers<[1], [0], [0], [1], [0, 0, 1, 1], [], []>} : vector<4x32xf32>, vector<32x384xf32>, vector<4x384xf32> -> vector<4x384xf32>
    %182 = vector.extract_strided_slice %181 {offsets = [0, 0], sizes = [2, 128], strides = [1, 1]} : vector<4x384xf32> to vector<2x128xf32>
    %183 = arith.addf %15, %182 : vector<2x128xf32>
    %184 = vector.extract_strided_slice %181 {offsets = [0, 128], sizes = [2, 128], strides = [1, 1]} : vector<4x384xf32> to vector<2x128xf32>
    %185 = vector.extract_strided_slice %181 {offsets = [2, 256], sizes = [2, 128], strides = [1, 1]} : vector<4x384xf32> to vector<2x128xf32>
    %186 = arith.addf %184, %185 : vector<2x128xf32>
    %187 = vector.broadcast %25 : vector<1x128xf32> to vector<2x128xf32>
    %188 = arith.addf %186, %187 : vector<2x128xf32>
    %189 = tpu.concatenate %183, %188 in 0 : vector<2x128xf32>, vector<2x128xf32> -> vector<4x128xf32>
    %190 = arith.negf %189 : vector<4x128xf32>
    %191 = math.exp %190 : vector<4x128xf32>
    %cst_35 = arith.constant 1.000000e+00 : f32
    %192 = vector.broadcast %cst_35 : f32 to vector<4x128xf32>
    %193 = arith.addf %192, %191 : vector<4x128xf32>
    %194 = arith.divf %192, %193 : vector<4x128xf32>
    %195 = vector.extract_strided_slice %194 {offsets = [0, 0], sizes = [4, 32], strides = [1, 1]} : vector<4x128xf32> to vector<4x32xf32>
    %196 = vector.extract_strided_slice %194 {offsets = [0, 32], sizes = [4, 32], strides = [1, 1]} : vector<4x128xf32> to vector<4x32xf32>
    %197 = vector.extract_strided_slice %194 {offsets = [0, 64], sizes = [4, 32], strides = [1, 1]} : vector<4x128xf32> to vector<4x32xf32>
    %cst_36 = arith.constant 2.000000e+00 : f32
    %198 = vector.broadcast %cst_36 : f32 to vector<4x32xf32>
    %199 = arith.mulf %198, %197 : vector<4x32xf32>
    %cst_37 = arith.constant 1.000000e+00 : f32
    %200 = vector.broadcast %cst_37 : f32 to vector<4x32xf32>
    %201 = arith.subf %199, %200 : vector<4x32xf32>
    %202 = vector.extract_strided_slice %194 {offsets = [0, 96], sizes = [4, 32], strides = [1, 1]} : vector<4x128xf32> to vector<4x32xf32>
    %203 = arith.mulf %196, %178 : vector<4x32xf32>
    %204 = arith.mulf %195, %201 : vector<4x32xf32>
    %205 = arith.addf %203, %204 : vector<4x32xf32>
    %206 = math.tanh %205 : vector<4x32xf32>
    %207 = arith.mulf %202, %206 : vector<4x32xf32>
    %cst_38 = arith.constant dense<0.000000e+00> : vector<4x384xf32>
    %208 = tpu.matmul %207, %24, %cst_38 {dimension_numbers = #tpu.dot_dimension_numbers<[1], [0], [0], [1], [0, 0, 1, 1], [], []>} : vector<4x32xf32>, vector<32x384xf32>, vector<4x384xf32> -> vector<4x384xf32>
    %209 = vector.extract_strided_slice %208 {offsets = [0, 0], sizes = [2, 128], strides = [1, 1]} : vector<4x384xf32> to vector<2x128xf32>
    %210 = arith.addf %16, %209 : vector<2x128xf32>
    %211 = vector.extract_strided_slice %208 {offsets = [0, 128], sizes = [2, 128], strides = [1, 1]} : vector<4x384xf32> to vector<2x128xf32>
    %212 = vector.extract_strided_slice %208 {offsets = [2, 256], sizes = [2, 128], strides = [1, 1]} : vector<4x384xf32> to vector<2x128xf32>
    %213 = arith.addf %211, %212 : vector<2x128xf32>
    %214 = vector.broadcast %25 : vector<1x128xf32> to vector<2x128xf32>
    %215 = arith.addf %213, %214 : vector<2x128xf32>
    %216 = tpu.concatenate %210, %215 in 0 : vector<2x128xf32>, vector<2x128xf32> -> vector<4x128xf32>
    %217 = arith.negf %216 : vector<4x128xf32>
    %218 = math.exp %217 : vector<4x128xf32>
    %cst_39 = arith.constant 1.000000e+00 : f32
    %219 = vector.broadcast %cst_39 : f32 to vector<4x128xf32>
    %220 = arith.addf %219, %218 : vector<4x128xf32>
    %221 = arith.divf %219, %220 : vector<4x128xf32>
    %222 = vector.extract_strided_slice %221 {offsets = [0, 0], sizes = [4, 32], strides = [1, 1]} : vector<4x128xf32> to vector<4x32xf32>
    %223 = vector.extract_strided_slice %221 {offsets = [0, 32], sizes = [4, 32], strides = [1, 1]} : vector<4x128xf32> to vector<4x32xf32>
    %224 = vector.extract_strided_slice %221 {offsets = [0, 64], sizes = [4, 32], strides = [1, 1]} : vector<4x128xf32> to vector<4x32xf32>
    %cst_40 = arith.constant 2.000000e+00 : f32
    %225 = vector.broadcast %cst_40 : f32 to vector<4x32xf32>
    %226 = arith.mulf %225, %224 : vector<4x32xf32>
    %cst_41 = arith.constant 1.000000e+00 : f32
    %227 = vector.broadcast %cst_41 : f32 to vector<4x32xf32>
    %228 = arith.subf %226, %227 : vector<4x32xf32>
    %229 = vector.extract_strided_slice %221 {offsets = [0, 96], sizes = [4, 32], strides = [1, 1]} : vector<4x128xf32> to vector<4x32xf32>
    %230 = arith.mulf %223, %205 : vector<4x32xf32>
    %231 = arith.mulf %222, %228 : vector<4x32xf32>
    %232 = arith.addf %230, %231 : vector<4x32xf32>
    %233 = math.tanh %232 : vector<4x32xf32>
    %234 = arith.mulf %229, %233 : vector<4x32xf32>
    %cst_42 = arith.constant dense<0.000000e+00> : vector<4x384xf32>
    %235 = tpu.matmul %234, %24, %cst_42 {dimension_numbers = #tpu.dot_dimension_numbers<[1], [0], [0], [1], [0, 0, 1, 1], [], []>} : vector<4x32xf32>, vector<32x384xf32>, vector<4x384xf32> -> vector<4x384xf32>
    %236 = vector.extract_strided_slice %235 {offsets = [0, 128], sizes = [2, 128], strides = [1, 1]} : vector<4x384xf32> to vector<2x128xf32>
    %237 = vector.extract_strided_slice %235 {offsets = [2, 256], sizes = [2, 128], strides = [1, 1]} : vector<4x384xf32> to vector<2x128xf32>
    %238 = arith.addf %236, %237 : vector<2x128xf32>
    %239 = vector.broadcast %25 : vector<1x128xf32> to vector<2x128xf32>
    %240 = arith.addf %238, %239 : vector<2x128xf32>
    %241 = arith.negf %240 : vector<2x128xf32>
    %242 = math.exp %241 : vector<2x128xf32>
    %cst_43 = arith.constant 1.000000e+00 : f32
    %243 = vector.broadcast %cst_43 : f32 to vector<2x128xf32>
    %244 = arith.addf %243, %242 : vector<2x128xf32>
    %245 = arith.divf %243, %244 : vector<2x128xf32>
    %246 = vector.extract_strided_slice %232 {offsets = [2, 0], sizes = [2, 32], strides = [1, 1]} : vector<4x32xf32> to vector<2x32xf32>
    %247 = vector.extract_strided_slice %245 {offsets = [0, 0], sizes = [2, 32], strides = [1, 1]} : vector<2x128xf32> to vector<2x32xf32>
    %248 = vector.extract_strided_slice %245 {offsets = [0, 32], sizes = [2, 32], strides = [1, 1]} : vector<2x128xf32> to vector<2x32xf32>
    %249 = vector.extract_strided_slice %245 {offsets = [0, 64], sizes = [2, 32], strides = [1, 1]} : vector<2x128xf32> to vector<2x32xf32>
    %cst_44 = arith.constant 2.000000e+00 : f32
    %250 = vector.broadcast %cst_44 : f32 to vector<2x32xf32>
    %251 = arith.mulf %250, %249 : vector<2x32xf32>
    %cst_45 = arith.constant 1.000000e+00 : f32
    %252 = vector.broadcast %cst_45 : f32 to vector<2x32xf32>
    %253 = arith.subf %251, %252 : vector<2x32xf32>
    %254 = vector.extract_strided_slice %245 {offsets = [0, 96], sizes = [2, 32], strides = [1, 1]} : vector<2x128xf32> to vector<2x32xf32>
    %255 = arith.mulf %248, %246 : vector<2x32xf32>
    %256 = arith.mulf %247, %253 : vector<2x32xf32>
    %257 = arith.addf %255, %256 : vector<2x32xf32>
    %258 = math.tanh %257 : vector<2x32xf32>
    %259 = arith.mulf %254, %258 : vector<2x32xf32>
    %260 = vector.extract_strided_slice %234 {offsets = [0, 0], sizes = [2, 32], strides = [1, 1]} : vector<4x32xf32> to vector<2x32xf32>
    %261 = vector.extract_strided_slice %232 {offsets = [0, 0], sizes = [2, 32], strides = [1, 1]} : vector<4x32xf32> to vector<2x32xf32>
    %c3 = arith.constant 3 : index
    %c0_46 = arith.constant 0 : index
    %c0_47 = arith.constant 0 : index
    %262 = vector.load %arg2[%c3, %c0_46, %c0_47] : memref<7x32x128xf32, #tpu.memory_space<vmem>>, vector<1x32x128xf32>
    %263 = vector.shape_cast %262 : vector<1x32x128xf32> to vector<32x128xf32>
    %c6 = arith.constant 6 : index
    %c0_48 = arith.constant 0 : index
    %c0_49 = arith.constant 0 : index
    %264 = vector.load %arg2[%c6, %c0_48, %c0_49] : memref<7x32x128xf32, #tpu.memory_space<vmem>>, vector<1x32x128xf32>
    %265 = vector.shape_cast %264 : vector<1x32x128xf32> to vector<32x128xf32>
    %c4 = arith.constant 4 : index
    %c0_50 = arith.constant 0 : index
    %c0_51 = arith.constant 0 : index
    %266 = vector.load %arg2[%c4, %c0_50, %c0_51] : memref<7x32x128xf32, #tpu.memory_space<vmem>>, vector<1x32x128xf32>
    %267 = vector.shape_cast %266 : vector<1x32x128xf32> to vector<32x128xf32>
    %268 = tpu.concatenate %263, %265, %267 in 1 : vector<32x128xf32>, vector<32x128xf32>, vector<32x128xf32> -> vector<32x384xf32>
    %269 = vector.extract_strided_slice %1 {offsets = [4, 0], sizes = [1, 128], strides = [1, 1]} : vector<6x128xf32> to vector<1x128xf32>
    %270 = vector.extract_strided_slice %1 {offsets = [5, 0], sizes = [1, 128], strides = [1, 1]} : vector<6x128xf32> to vector<1x128xf32>
    %c5 = arith.constant 5 : index
    %c0_52 = arith.constant 0 : index
    %c0_53 = arith.constant 0 : index
    %271 = vector.load %arg2[%c5, %c0_52, %c0_53] : memref<7x32x128xf32, #tpu.memory_space<vmem>>, vector<1x32x128xf32>
    %272 = vector.shape_cast %271 : vector<1x32x128xf32> to vector<32x128xf32>
    %cst_54 = arith.constant dense<0.000000e+00> : vector<2x128xf32>
    %273 = tpu.matmul %259, %272, %cst_54 {dimension_numbers = #tpu.dot_dimension_numbers<[1], [0], [0], [1], [0, 0, 1, 1], [], []>} : vector<2x32xf32>, vector<32x128xf32>, vector<2x128xf32> -> vector<2x128xf32>
    %274 = vector.broadcast %269 : vector<1x128xf32> to vector<2x128xf32>
    %275 = arith.addf %273, %274 : vector<2x128xf32>
    %276 = tpu.concatenate %260, %259 in 0 : vector<2x32xf32>, vector<2x32xf32> -> vector<4x32xf32>
    %277 = tpu.concatenate %261, %257 in 0 : vector<2x32xf32>, vector<2x32xf32> -> vector<4x32xf32>
    %cst_55 = arith.constant dense<0.000000e+00> : vector<4x384xf32>
    %278 = tpu.matmul %276, %268, %cst_55 {dimension_numbers = #tpu.dot_dimension_numbers<[1], [0], [0], [1], [0, 0, 1, 1], [], []>} : vector<4x32xf32>, vector<32x384xf32>, vector<4x384xf32> -> vector<4x384xf32>
    %279 = vector.extract_strided_slice %278 {offsets = [0, 0], sizes = [2, 128], strides = [1, 1]} : vector<4x384xf32> to vector<2x128xf32>
    %280 = arith.addf %275, %279 : vector<2x128xf32>
    %281 = arith.negf %280 : vector<2x128xf32>
    %282 = math.exp %281 : vector<2x128xf32>
    %cst_56 = arith.constant 1.000000e+00 : f32
    %283 = vector.broadcast %cst_56 : f32 to vector<2x128xf32>
    %284 = arith.addf %283, %282 : vector<2x128xf32>
    %285 = arith.divf %283, %284 : vector<2x128xf32>
    %286 = vector.extract_strided_slice %277 {offsets = [0, 0], sizes = [2, 32], strides = [1, 1]} : vector<4x32xf32> to vector<2x32xf32>
    %287 = vector.extract_strided_slice %285 {offsets = [0, 0], sizes = [2, 32], strides = [1, 1]} : vector<2x128xf32> to vector<2x32xf32>
    %288 = vector.extract_strided_slice %285 {offsets = [0, 32], sizes = [2, 32], strides = [1, 1]} : vector<2x128xf32> to vector<2x32xf32>
    %289 = vector.extract_strided_slice %285 {offsets = [0, 64], sizes = [2, 32], strides = [1, 1]} : vector<2x128xf32> to vector<2x32xf32>
    %cst_57 = arith.constant 2.000000e+00 : f32
    %290 = vector.broadcast %cst_57 : f32 to vector<2x32xf32>
    %291 = arith.mulf %290, %289 : vector<2x32xf32>
    %cst_58 = arith.constant 1.000000e+00 : f32
    %292 = vector.broadcast %cst_58 : f32 to vector<2x32xf32>
    %293 = arith.subf %291, %292 : vector<2x32xf32>
    %294 = vector.extract_strided_slice %285 {offsets = [0, 96], sizes = [2, 32], strides = [1, 1]} : vector<2x128xf32> to vector<2x32xf32>
    %295 = arith.mulf %288, %286 : vector<2x32xf32>
    %296 = arith.mulf %287, %293 : vector<2x32xf32>
    %297 = arith.addf %295, %296 : vector<2x32xf32>
    %298 = math.tanh %297 : vector<2x32xf32>
    %299 = arith.mulf %294, %298 : vector<2x32xf32>
    %300 = vector.extract_strided_slice %276 {offsets = [2, 0], sizes = [2, 32], strides = [1, 1]} : vector<4x32xf32> to vector<2x32xf32>
    %301 = tpu.concatenate %299, %300 in 0 : vector<2x32xf32>, vector<2x32xf32> -> vector<4x32xf32>
    %302 = vector.extract_strided_slice %277 {offsets = [2, 0], sizes = [2, 32], strides = [1, 1]} : vector<4x32xf32> to vector<2x32xf32>
    %303 = tpu.concatenate %297, %302 in 0 : vector<2x32xf32>, vector<2x32xf32> -> vector<4x32xf32>
    %cst_59 = arith.constant dense<0.000000e+00> : vector<4x384xf32>
    %304 = tpu.matmul %301, %268, %cst_59 {dimension_numbers = #tpu.dot_dimension_numbers<[1], [0], [0], [1], [0, 0, 1, 1], [], []>} : vector<4x32xf32>, vector<32x384xf32>, vector<4x384xf32> -> vector<4x384xf32>
    %305 = vector.extract_strided_slice %304 {offsets = [0, 0], sizes = [2, 128], strides = [1, 1]} : vector<4x384xf32> to vector<2x128xf32>
    %306 = arith.addf %275, %305 : vector<2x128xf32>
    %307 = vector.extract_strided_slice %304 {offsets = [0, 128], sizes = [2, 128], strides = [1, 1]} : vector<4x384xf32> to vector<2x128xf32>
    %308 = vector.extract_strided_slice %304 {offsets = [2, 256], sizes = [2, 128], strides = [1, 1]} : vector<4x384xf32> to vector<2x128xf32>
    %309 = arith.addf %307, %308 : vector<2x128xf32>
    %310 = vector.broadcast %270 : vector<1x128xf32> to vector<2x128xf32>
    %311 = arith.addf %309, %310 : vector<2x128xf32>
    %312 = tpu.concatenate %306, %311 in 0 : vector<2x128xf32>, vector<2x128xf32> -> vector<4x128xf32>
    %313 = arith.negf %312 : vector<4x128xf32>
    %314 = math.exp %313 : vector<4x128xf32>
    %cst_60 = arith.constant 1.000000e+00 : f32
    %315 = vector.broadcast %cst_60 : f32 to vector<4x128xf32>
    %316 = arith.addf %315, %314 : vector<4x128xf32>
    %317 = arith.divf %315, %316 : vector<4x128xf32>
    %318 = vector.extract_strided_slice %317 {offsets = [0, 0], sizes = [4, 32], strides = [1, 1]} : vector<4x128xf32> to vector<4x32xf32>
    %319 = vector.extract_strided_slice %317 {offsets = [0, 32], sizes = [4, 32], strides = [1, 1]} : vector<4x128xf32> to vector<4x32xf32>
    %320 = vector.extract_strided_slice %317 {offsets = [0, 64], sizes = [4, 32], strides = [1, 1]} : vector<4x128xf32> to vector<4x32xf32>
    %cst_61 = arith.constant 2.000000e+00 : f32
    %321 = vector.broadcast %cst_61 : f32 to vector<4x32xf32>
    %322 = arith.mulf %321, %320 : vector<4x32xf32>
    %cst_62 = arith.constant 1.000000e+00 : f32
    %323 = vector.broadcast %cst_62 : f32 to vector<4x32xf32>
    %324 = arith.subf %322, %323 : vector<4x32xf32>
    %325 = vector.extract_strided_slice %317 {offsets = [0, 96], sizes = [4, 32], strides = [1, 1]} : vector<4x128xf32> to vector<4x32xf32>
    %326 = arith.mulf %319, %303 : vector<4x32xf32>
    %327 = arith.mulf %318, %324 : vector<4x32xf32>
    %328 = arith.addf %326, %327 : vector<4x32xf32>
    %329 = math.tanh %328 : vector<4x32xf32>
    %330 = arith.mulf %325, %329 : vector<4x32xf32>
    %331 = vector.extract_strided_slice %330 {offsets = [2, 0], sizes = [2, 32], strides = [1, 1]} : vector<4x32xf32> to vector<2x32xf32>
    %cst_63 = arith.constant dense<0.000000e+00> : vector<4x384xf32>
    %332 = tpu.matmul %330, %268, %cst_63 {dimension_numbers = #tpu.dot_dimension_numbers<[1], [0], [0], [1], [0, 0, 1, 1], [], []>} : vector<4x32xf32>, vector<32x384xf32>, vector<4x384xf32> -> vector<4x384xf32>
    %333 = vector.extract_strided_slice %332 {offsets = [0, 0], sizes = [2, 128], strides = [1, 1]} : vector<4x384xf32> to vector<2x128xf32>
    %334 = arith.addf %275, %333 : vector<2x128xf32>
    %335 = vector.extract_strided_slice %332 {offsets = [0, 128], sizes = [2, 128], strides = [1, 1]} : vector<4x384xf32> to vector<2x128xf32>
    %336 = vector.extract_strided_slice %332 {offsets = [2, 256], sizes = [2, 128], strides = [1, 1]} : vector<4x384xf32> to vector<2x128xf32>
    %337 = arith.addf %335, %336 : vector<2x128xf32>
    %338 = vector.broadcast %270 : vector<1x128xf32> to vector<2x128xf32>
    %339 = arith.addf %337, %338 : vector<2x128xf32>
    %340 = tpu.concatenate %334, %339 in 0 : vector<2x128xf32>, vector<2x128xf32> -> vector<4x128xf32>
    %341 = arith.negf %340 : vector<4x128xf32>
    %342 = math.exp %341 : vector<4x128xf32>
    %cst_64 = arith.constant 1.000000e+00 : f32
    %343 = vector.broadcast %cst_64 : f32 to vector<4x128xf32>
    %344 = arith.addf %343, %342 : vector<4x128xf32>
    %345 = arith.divf %343, %344 : vector<4x128xf32>
    %346 = vector.extract_strided_slice %345 {offsets = [0, 0], sizes = [4, 32], strides = [1, 1]} : vector<4x128xf32> to vector<4x32xf32>
    %347 = vector.extract_strided_slice %345 {offsets = [0, 32], sizes = [4, 32], strides = [1, 1]} : vector<4x128xf32> to vector<4x32xf32>
    %348 = vector.extract_strided_slice %345 {offsets = [0, 64], sizes = [4, 32], strides = [1, 1]} : vector<4x128xf32> to vector<4x32xf32>
    %cst_65 = arith.constant 2.000000e+00 : f32
    %349 = vector.broadcast %cst_65 : f32 to vector<4x32xf32>
    %350 = arith.mulf %349, %348 : vector<4x32xf32>
    %cst_66 = arith.constant 1.000000e+00 : f32
    %351 = vector.broadcast %cst_66 : f32 to vector<4x32xf32>
    %352 = arith.subf %350, %351 : vector<4x32xf32>
    %353 = vector.extract_strided_slice %345 {offsets = [0, 96], sizes = [4, 32], strides = [1, 1]} : vector<4x128xf32> to vector<4x32xf32>
    %354 = arith.mulf %347, %328 : vector<4x32xf32>
    %355 = arith.mulf %346, %352 : vector<4x32xf32>
    %356 = arith.addf %354, %355 : vector<4x32xf32>
    %357 = math.tanh %356 : vector<4x32xf32>
    %358 = arith.mulf %353, %357 : vector<4x32xf32>
    %359 = vector.extract_strided_slice %358 {offsets = [2, 0], sizes = [2, 32], strides = [1, 1]} : vector<4x32xf32> to vector<2x32xf32>
    %cst_67 = arith.constant dense<0.000000e+00> : vector<4x384xf32>
    %360 = tpu.matmul %358, %268, %cst_67 {dimension_numbers = #tpu.dot_dimension_numbers<[1], [0], [0], [1], [0, 0, 1, 1], [], []>} : vector<4x32xf32>, vector<32x384xf32>, vector<4x384xf32> -> vector<4x384xf32>
    %361 = vector.extract_strided_slice %360 {offsets = [0, 0], sizes = [2, 128], strides = [1, 1]} : vector<4x384xf32> to vector<2x128xf32>
    %362 = arith.addf %275, %361 : vector<2x128xf32>
    %363 = vector.extract_strided_slice %360 {offsets = [0, 128], sizes = [2, 128], strides = [1, 1]} : vector<4x384xf32> to vector<2x128xf32>
    %364 = vector.extract_strided_slice %360 {offsets = [2, 256], sizes = [2, 128], strides = [1, 1]} : vector<4x384xf32> to vector<2x128xf32>
    %365 = arith.addf %363, %364 : vector<2x128xf32>
    %366 = vector.broadcast %270 : vector<1x128xf32> to vector<2x128xf32>
    %367 = arith.addf %365, %366 : vector<2x128xf32>
    %368 = tpu.concatenate %362, %367 in 0 : vector<2x128xf32>, vector<2x128xf32> -> vector<4x128xf32>
    %369 = arith.negf %368 : vector<4x128xf32>
    %370 = math.exp %369 : vector<4x128xf32>
    %cst_68 = arith.constant 1.000000e+00 : f32
    %371 = vector.broadcast %cst_68 : f32 to vector<4x128xf32>
    %372 = arith.addf %371, %370 : vector<4x128xf32>
    %373 = arith.divf %371, %372 : vector<4x128xf32>
    %374 = vector.extract_strided_slice %373 {offsets = [0, 0], sizes = [4, 32], strides = [1, 1]} : vector<4x128xf32> to vector<4x32xf32>
    %375 = vector.extract_strided_slice %373 {offsets = [0, 32], sizes = [4, 32], strides = [1, 1]} : vector<4x128xf32> to vector<4x32xf32>
    %376 = vector.extract_strided_slice %373 {offsets = [0, 64], sizes = [4, 32], strides = [1, 1]} : vector<4x128xf32> to vector<4x32xf32>
    %cst_69 = arith.constant 2.000000e+00 : f32
    %377 = vector.broadcast %cst_69 : f32 to vector<4x32xf32>
    %378 = arith.mulf %377, %376 : vector<4x32xf32>
    %cst_70 = arith.constant 1.000000e+00 : f32
    %379 = vector.broadcast %cst_70 : f32 to vector<4x32xf32>
    %380 = arith.subf %378, %379 : vector<4x32xf32>
    %381 = vector.extract_strided_slice %373 {offsets = [0, 96], sizes = [4, 32], strides = [1, 1]} : vector<4x128xf32> to vector<4x32xf32>
    %382 = arith.mulf %375, %356 : vector<4x32xf32>
    %383 = arith.mulf %374, %380 : vector<4x32xf32>
    %384 = arith.addf %382, %383 : vector<4x32xf32>
    %385 = math.tanh %384 : vector<4x32xf32>
    %386 = arith.mulf %381, %385 : vector<4x32xf32>
    %387 = vector.extract_strided_slice %386 {offsets = [2, 0], sizes = [2, 32], strides = [1, 1]} : vector<4x32xf32> to vector<2x32xf32>
    %cst_71 = arith.constant dense<0.000000e+00> : vector<4x384xf32>
    %388 = tpu.matmul %386, %268, %cst_71 {dimension_numbers = #tpu.dot_dimension_numbers<[1], [0], [0], [1], [0, 0, 1, 1], [], []>} : vector<4x32xf32>, vector<32x384xf32>, vector<4x384xf32> -> vector<4x384xf32>
    %389 = vector.extract_strided_slice %388 {offsets = [0, 0], sizes = [2, 128], strides = [1, 1]} : vector<4x384xf32> to vector<2x128xf32>
    %390 = arith.addf %275, %389 : vector<2x128xf32>
    %391 = vector.extract_strided_slice %388 {offsets = [0, 128], sizes = [2, 128], strides = [1, 1]} : vector<4x384xf32> to vector<2x128xf32>
    %392 = vector.extract_strided_slice %388 {offsets = [2, 256], sizes = [2, 128], strides = [1, 1]} : vector<4x384xf32> to vector<2x128xf32>
    %393 = arith.addf %391, %392 : vector<2x128xf32>
    %394 = vector.broadcast %270 : vector<1x128xf32> to vector<2x128xf32>
    %395 = arith.addf %393, %394 : vector<2x128xf32>
    %396 = tpu.concatenate %390, %395 in 0 : vector<2x128xf32>, vector<2x128xf32> -> vector<4x128xf32>
    %397 = arith.negf %396 : vector<4x128xf32>
    %398 = math.exp %397 : vector<4x128xf32>
    %cst_72 = arith.constant 1.000000e+00 : f32
    %399 = vector.broadcast %cst_72 : f32 to vector<4x128xf32>
    %400 = arith.addf %399, %398 : vector<4x128xf32>
    %401 = arith.divf %399, %400 : vector<4x128xf32>
    %402 = vector.extract_strided_slice %401 {offsets = [0, 0], sizes = [4, 32], strides = [1, 1]} : vector<4x128xf32> to vector<4x32xf32>
    %403 = vector.extract_strided_slice %401 {offsets = [0, 32], sizes = [4, 32], strides = [1, 1]} : vector<4x128xf32> to vector<4x32xf32>
    %404 = vector.extract_strided_slice %401 {offsets = [0, 64], sizes = [4, 32], strides = [1, 1]} : vector<4x128xf32> to vector<4x32xf32>
    %cst_73 = arith.constant 2.000000e+00 : f32
    %405 = vector.broadcast %cst_73 : f32 to vector<4x32xf32>
    %406 = arith.mulf %405, %404 : vector<4x32xf32>
    %cst_74 = arith.constant 1.000000e+00 : f32
    %407 = vector.broadcast %cst_74 : f32 to vector<4x32xf32>
    %408 = arith.subf %406, %407 : vector<4x32xf32>
    %409 = vector.extract_strided_slice %401 {offsets = [0, 96], sizes = [4, 32], strides = [1, 1]} : vector<4x128xf32> to vector<4x32xf32>
    %410 = arith.mulf %403, %384 : vector<4x32xf32>
    %411 = arith.mulf %402, %408 : vector<4x32xf32>
    %412 = arith.addf %410, %411 : vector<4x32xf32>
    %413 = math.tanh %412 : vector<4x32xf32>
    %414 = arith.mulf %409, %413 : vector<4x32xf32>
    %415 = vector.extract_strided_slice %414 {offsets = [2, 0], sizes = [2, 32], strides = [1, 1]} : vector<4x32xf32> to vector<2x32xf32>
    %cst_75 = arith.constant dense<0.000000e+00> : vector<4x384xf32>
    %416 = tpu.matmul %414, %268, %cst_75 {dimension_numbers = #tpu.dot_dimension_numbers<[1], [0], [0], [1], [0, 0, 1, 1], [], []>} : vector<4x32xf32>, vector<32x384xf32>, vector<4x384xf32> -> vector<4x384xf32>
    %417 = vector.extract_strided_slice %416 {offsets = [0, 0], sizes = [2, 128], strides = [1, 1]} : vector<4x384xf32> to vector<2x128xf32>
    %418 = arith.addf %275, %417 : vector<2x128xf32>
    %419 = vector.extract_strided_slice %416 {offsets = [0, 128], sizes = [2, 128], strides = [1, 1]} : vector<4x384xf32> to vector<2x128xf32>
    %420 = vector.extract_strided_slice %416 {offsets = [2, 256], sizes = [2, 128], strides = [1, 1]} : vector<4x384xf32> to vector<2x128xf32>
    %421 = arith.addf %419, %420 : vector<2x128xf32>
    %422 = vector.broadcast %270 : vector<1x128xf32> to vector<2x128xf32>
    %423 = arith.addf %421, %422 : vector<2x128xf32>
    %424 = tpu.concatenate %418, %423 in 0 : vector<2x128xf32>, vector<2x128xf32> -> vector<4x128xf32>
    %425 = arith.negf %424 : vector<4x128xf32>
    %426 = math.exp %425 : vector<4x128xf32>
    %cst_76 = arith.constant 1.000000e+00 : f32
    %427 = vector.broadcast %cst_76 : f32 to vector<4x128xf32>
    %428 = arith.addf %427, %426 : vector<4x128xf32>
    %429 = arith.divf %427, %428 : vector<4x128xf32>
    %430 = vector.extract_strided_slice %429 {offsets = [0, 0], sizes = [4, 32], strides = [1, 1]} : vector<4x128xf32> to vector<4x32xf32>
    %431 = vector.extract_strided_slice %429 {offsets = [0, 32], sizes = [4, 32], strides = [1, 1]} : vector<4x128xf32> to vector<4x32xf32>
    %432 = vector.extract_strided_slice %429 {offsets = [0, 64], sizes = [4, 32], strides = [1, 1]} : vector<4x128xf32> to vector<4x32xf32>
    %cst_77 = arith.constant 2.000000e+00 : f32
    %433 = vector.broadcast %cst_77 : f32 to vector<4x32xf32>
    %434 = arith.mulf %433, %432 : vector<4x32xf32>
    %cst_78 = arith.constant 1.000000e+00 : f32
    %435 = vector.broadcast %cst_78 : f32 to vector<4x32xf32>
    %436 = arith.subf %434, %435 : vector<4x32xf32>
    %437 = vector.extract_strided_slice %429 {offsets = [0, 96], sizes = [4, 32], strides = [1, 1]} : vector<4x128xf32> to vector<4x32xf32>
    %438 = arith.mulf %431, %412 : vector<4x32xf32>
    %439 = arith.mulf %430, %436 : vector<4x32xf32>
    %440 = arith.addf %438, %439 : vector<4x32xf32>
    %441 = math.tanh %440 : vector<4x32xf32>
    %442 = arith.mulf %437, %441 : vector<4x32xf32>
    %443 = vector.extract_strided_slice %442 {offsets = [2, 0], sizes = [2, 32], strides = [1, 1]} : vector<4x32xf32> to vector<2x32xf32>
    %cst_79 = arith.constant dense<0.000000e+00> : vector<4x384xf32>
    %444 = tpu.matmul %442, %268, %cst_79 {dimension_numbers = #tpu.dot_dimension_numbers<[1], [0], [0], [1], [0, 0, 1, 1], [], []>} : vector<4x32xf32>, vector<32x384xf32>, vector<4x384xf32> -> vector<4x384xf32>
    %445 = vector.extract_strided_slice %444 {offsets = [0, 0], sizes = [2, 128], strides = [1, 1]} : vector<4x384xf32> to vector<2x128xf32>
    %446 = arith.addf %275, %445 : vector<2x128xf32>
    %447 = vector.extract_strided_slice %444 {offsets = [0, 128], sizes = [2, 128], strides = [1, 1]} : vector<4x384xf32> to vector<2x128xf32>
    %448 = vector.extract_strided_slice %444 {offsets = [2, 256], sizes = [2, 128], strides = [1, 1]} : vector<4x384xf32> to vector<2x128xf32>
    %449 = arith.addf %447, %448 : vector<2x128xf32>
    %450 = vector.broadcast %270 : vector<1x128xf32> to vector<2x128xf32>
    %451 = arith.addf %449, %450 : vector<2x128xf32>
    %452 = tpu.concatenate %446, %451 in 0 : vector<2x128xf32>, vector<2x128xf32> -> vector<4x128xf32>
    %453 = arith.negf %452 : vector<4x128xf32>
    %454 = math.exp %453 : vector<4x128xf32>
    %cst_80 = arith.constant 1.000000e+00 : f32
    %455 = vector.broadcast %cst_80 : f32 to vector<4x128xf32>
    %456 = arith.addf %455, %454 : vector<4x128xf32>
    %457 = arith.divf %455, %456 : vector<4x128xf32>
    %458 = vector.extract_strided_slice %457 {offsets = [0, 0], sizes = [4, 32], strides = [1, 1]} : vector<4x128xf32> to vector<4x32xf32>
    %459 = vector.extract_strided_slice %457 {offsets = [0, 32], sizes = [4, 32], strides = [1, 1]} : vector<4x128xf32> to vector<4x32xf32>
    %460 = vector.extract_strided_slice %457 {offsets = [0, 64], sizes = [4, 32], strides = [1, 1]} : vector<4x128xf32> to vector<4x32xf32>
    %cst_81 = arith.constant 2.000000e+00 : f32
    %461 = vector.broadcast %cst_81 : f32 to vector<4x32xf32>
    %462 = arith.mulf %461, %460 : vector<4x32xf32>
    %cst_82 = arith.constant 1.000000e+00 : f32
    %463 = vector.broadcast %cst_82 : f32 to vector<4x32xf32>
    %464 = arith.subf %462, %463 : vector<4x32xf32>
    %465 = vector.extract_strided_slice %457 {offsets = [0, 96], sizes = [4, 32], strides = [1, 1]} : vector<4x128xf32> to vector<4x32xf32>
    %466 = arith.mulf %459, %440 : vector<4x32xf32>
    %467 = arith.mulf %458, %464 : vector<4x32xf32>
    %468 = arith.addf %466, %467 : vector<4x32xf32>
    %469 = math.tanh %468 : vector<4x32xf32>
    %470 = arith.mulf %465, %469 : vector<4x32xf32>
    %471 = vector.extract_strided_slice %470 {offsets = [2, 0], sizes = [2, 32], strides = [1, 1]} : vector<4x32xf32> to vector<2x32xf32>
    %cst_83 = arith.constant dense<0.000000e+00> : vector<4x384xf32>
    %472 = tpu.matmul %470, %268, %cst_83 {dimension_numbers = #tpu.dot_dimension_numbers<[1], [0], [0], [1], [0, 0, 1, 1], [], []>} : vector<4x32xf32>, vector<32x384xf32>, vector<4x384xf32> -> vector<4x384xf32>
    %473 = vector.extract_strided_slice %472 {offsets = [0, 128], sizes = [2, 128], strides = [1, 1]} : vector<4x384xf32> to vector<2x128xf32>
    %474 = vector.extract_strided_slice %472 {offsets = [2, 256], sizes = [2, 128], strides = [1, 1]} : vector<4x384xf32> to vector<2x128xf32>
    %475 = arith.addf %473, %474 : vector<2x128xf32>
    %476 = vector.broadcast %270 : vector<1x128xf32> to vector<2x128xf32>
    %477 = arith.addf %475, %476 : vector<2x128xf32>
    %478 = arith.negf %477 : vector<2x128xf32>
    %479 = math.exp %478 : vector<2x128xf32>
    %cst_84 = arith.constant 1.000000e+00 : f32
    %480 = vector.broadcast %cst_84 : f32 to vector<2x128xf32>
    %481 = arith.addf %480, %479 : vector<2x128xf32>
    %482 = arith.divf %480, %481 : vector<2x128xf32>
    %483 = vector.extract_strided_slice %468 {offsets = [2, 0], sizes = [2, 32], strides = [1, 1]} : vector<4x32xf32> to vector<2x32xf32>
    %484 = vector.extract_strided_slice %482 {offsets = [0, 0], sizes = [2, 32], strides = [1, 1]} : vector<2x128xf32> to vector<2x32xf32>
    %485 = vector.extract_strided_slice %482 {offsets = [0, 32], sizes = [2, 32], strides = [1, 1]} : vector<2x128xf32> to vector<2x32xf32>
    %486 = vector.extract_strided_slice %482 {offsets = [0, 64], sizes = [2, 32], strides = [1, 1]} : vector<2x128xf32> to vector<2x32xf32>
    %cst_85 = arith.constant 2.000000e+00 : f32
    %487 = vector.broadcast %cst_85 : f32 to vector<2x32xf32>
    %488 = arith.mulf %487, %486 : vector<2x32xf32>
    %cst_86 = arith.constant 1.000000e+00 : f32
    %489 = vector.broadcast %cst_86 : f32 to vector<2x32xf32>
    %490 = arith.subf %488, %489 : vector<2x32xf32>
    %491 = vector.extract_strided_slice %482 {offsets = [0, 96], sizes = [2, 32], strides = [1, 1]} : vector<2x128xf32> to vector<2x32xf32>
    %492 = arith.mulf %485, %483 : vector<2x32xf32>
    %493 = arith.mulf %484, %490 : vector<2x32xf32>
    %494 = arith.addf %492, %493 : vector<2x32xf32>
    %495 = math.tanh %494 : vector<2x32xf32>
    %496 = arith.mulf %491, %495 : vector<2x32xf32>
    %497 = tpu.concatenate %259, %331, %359, %387, %415, %443, %471, %496 in 0 : vector<2x32xf32>, vector<2x32xf32>, vector<2x32xf32>, vector<2x32xf32>, vector<2x32xf32>, vector<2x32xf32>, vector<2x32xf32>, vector<2x32xf32> -> vector<16x32xf32>
    %c0_87 = arith.constant 0 : index
    %c0_88 = arith.constant 0 : index
    %498 = vector.load %arg3[%c0_87, %c0_88] : memref<33x2xf32, #tpu.memory_space<vmem>>, vector<33x2xf32>
    %499 = vector.extract_strided_slice %498 {offsets = [0, 0], sizes = [32, 2], strides = [1, 1]} : vector<33x2xf32> to vector<32x2xf32>
    %cst_89 = arith.constant dense<0.000000e+00> : vector<16x2xf32>
    %500 = tpu.matmul %497, %499, %cst_89 {dimension_numbers = #tpu.dot_dimension_numbers<[1], [0], [0], [1], [0, 0, 1, 1], [], []>} : vector<16x32xf32>, vector<32x2xf32>, vector<16x2xf32> -> vector<16x2xf32>
    %501 = vector.extract_strided_slice %498 {offsets = [32, 0], sizes = [1, 2], strides = [1, 1]} : vector<33x2xf32> to vector<1x2xf32>
    %502 = vector.broadcast %501 : vector<1x2xf32> to vector<16x2xf32>
    %503 = arith.addf %500, %502 : vector<16x2xf32>
    %504 = vector.extract_strided_slice %503 {offsets = [0, 0], sizes = [2, 2], strides = [1, 1]} : vector<16x2xf32> to vector<2x2xf32>
    %505 = arith.addf %3, %504 : vector<2x2xf32>
    %506 = vector.extract_strided_slice %503 {offsets = [2, 0], sizes = [2, 2], strides = [1, 1]} : vector<16x2xf32> to vector<2x2xf32>
    %507 = arith.addf %505, %506 : vector<2x2xf32>
    %508 = vector.extract_strided_slice %503 {offsets = [4, 0], sizes = [2, 2], strides = [1, 1]} : vector<16x2xf32> to vector<2x2xf32>
    %509 = arith.addf %507, %508 : vector<2x2xf32>
    %510 = vector.extract_strided_slice %503 {offsets = [6, 0], sizes = [2, 2], strides = [1, 1]} : vector<16x2xf32> to vector<2x2xf32>
    %511 = arith.addf %509, %510 : vector<2x2xf32>
    %512 = vector.extract_strided_slice %503 {offsets = [8, 0], sizes = [2, 2], strides = [1, 1]} : vector<16x2xf32> to vector<2x2xf32>
    %513 = arith.addf %511, %512 : vector<2x2xf32>
    %514 = vector.extract_strided_slice %503 {offsets = [10, 0], sizes = [2, 2], strides = [1, 1]} : vector<16x2xf32> to vector<2x2xf32>
    %515 = arith.addf %513, %514 : vector<2x2xf32>
    %516 = vector.extract_strided_slice %503 {offsets = [12, 0], sizes = [2, 2], strides = [1, 1]} : vector<16x2xf32> to vector<2x2xf32>
    %517 = arith.addf %515, %516 : vector<2x2xf32>
    %518 = vector.extract_strided_slice %503 {offsets = [14, 0], sizes = [2, 2], strides = [1, 1]} : vector<16x2xf32> to vector<2x2xf32>
    %519 = arith.addf %517, %518 : vector<2x2xf32>
    %520 = tpu.concatenate %505, %507, %509, %511, %513, %515, %517, %519 in 0 : vector<2x2xf32>, vector<2x2xf32>, vector<2x2xf32>, vector<2x2xf32>, vector<2x2xf32>, vector<2x2xf32>, vector<2x2xf32>, vector<2x2xf32> -> vector<16x2xf32>
    %c0_90 = arith.constant 0 : index
    %c0_91 = arith.constant 0 : index
    %521 = vector.load %arg4[%c0_90, %c0_91] : memref<16x2xf32, #tpu.memory_space<vmem>>, vector<16x2xf32>
    tpu.vector_store %arg4[%c0_90, %c0_91], %520 {strides = array<i32>} : memref<16x2xf32, #tpu.memory_space<vmem>>, vector<16x2xf32>,
    return
  }
}

</mosaic_0001>

<bundles_post_ra>
// kernel: double_lstm_pure_forward.1
= control target key start
LH: loop header
LB: loop body
LE: loop exit
PB: predicated region body
PF: predicated region fallthrough
CT: control target
= control target key end

     0   :  { %vm32_vm0 = vcmask 1041408   ;;  %vm25_vm1 = vcmask 15360   ;;  %v21_v3 = vlaneseq  ;;  %s3997_s21 = smov 64   ;;  %s3998_s22 = smov 32   ;;  %v3999_v24 = vmov 0.0|0.0   ;;  %s4564_s1 = inlined_call_operand.vmem [shape: f32[6,128], index: 1, kind: input, shape index: {}]   ;;  %s4565_s0 = inlined_call_operand.vmem [shape: f32[18,2], index: 0, kind: input, shape index: {}]   ;;  %s4566_s2 = inlined_call_operand.vmem [shape: f32[7,32,128], index: 2, kind: input, shape index: {}]   ;;  %s4567_s3 = inlined_call_operand.vmem [shape: f32[33,2], index: 3, kind: input, shape index: {}]   ;;  %s4568_s4 = inlined_call_operand.vmem [shape: f32[16,2], index: 4, kind: output, shape index: {}]  }
   0x1   :  { %v4030_v0 = vld [vmem:[%s4564_s1] sm:$0x3f]  ;;  %v18_v2 = vld [vmem:[%s4565_s0 + $0x8] sm:$0xff]  ;;  %v4000_v26 = vmov 0.0   ;;  %vm4001_vm2 = vmmov 0   ;;  %v3285_v33 = vld [vmem:[%s4566_s2 + $0x50] sm:$0xff] }
   0x2   :  { %v17_v1 = vld [vmem:[%s4565_s0] sm:$0xff]  ;;  %3465 = vmatprep.subr.msk.mxu0 %vm32_vm0, %v4030_v0  ;;  %v4044_v4 = vshrl.u32 %v21_v3, 7  ;;  %v3284_v23 = vld [vmem:[%s4566_s2 + $0x48] sm:$0xff]  ;;  %222 = vmatprep.mubr.f32.mxu1 %v4000_v26  ;;  %v3286_v34 = vld [vmem:[%s4566_s2 + $0x58] sm:$0xff]  ;;  %vm155_vm3 = vcmask 261120   ;;  %vm3127_vm4 = vcmask 1043456  }
   0x3   :  { %3467 = vmatprep.mubr.msk.f32.mxu0 %vm25_vm1, %v17_v1  ;;  %3466 = vmatpush3.msk.msra.mxu0 %vm32_vm0, %v4030_v0  ;;  %v3283_v22 = vld [vmem:[%s4566_s2 + $0x40] sm:$0xff]  ;;  %v112_v28 = vld [vmem:[%s4566_s2 + $0x8] sm:$0xff]  ;;  %v113_v35 = vld [vmem:[%s4566_s2 + $0x10] sm:$0xff]  ;;  %v4096_v36 = vpack.c.bf16 %v3286_v34, %v3285_v33  ;;  %vm3129_vm5 = vcmask 1045504  }
   0x4   :  { %3468 = vmatmul.mubr.msk.f32.vlgmr.msra.gmra.mrb[0].mxu0 %vm25_vm1, %v18_v2  ;;  %v23_v5 = vsub.s32 2, %v4044_v4  ;;  %3665 = vmatprep.subr.bf16.mxu0 %v3999_v24  ;;  %v111_v25 = vld [vmem:[%s4566_s2] sm:$0xff]  ;;  %v4069_v27 = vpack.c.bf16 %v3284_v23, %v3283_v22  ;;  %v3288_v30 = vld [vmem:[%s4566_s2 + $0x28] sm:$0xff]  ;;  %v114_v37 = vld [vmem:[%s4566_s2 + $0x18] sm:$0xff]  ;;  %v309_v47 = vsub.s32 3, %v4044_v4 }
   0x5   :  { %v3287_v29 = vld [vmem:[%s4566_s2 + $0x20] sm:$0xff]  ;;  %3478 = vmatprep.mubr.msk.f32.mxu0 %vm4001_vm2, %v4000_v26  ;;  %v4082_v31 = vpack.c.bf16 %v112_v28, %v111_v25  ;;  %v3289_v38 = vld [vmem:[%s4566_s2 + $0x30] sm:$0xff]  ;;  %v3290_v39 = vld [vmem:[%s4566_s2 + $0x38] sm:$0xff]  ;;  %v4109_v40 = vpack.c.bf16 %v114_v37, %v113_v35 }
   0x6   :  { %v24_v6 = vrot.slane %v4030_v0, %v23_v5  ;;  %v4084_v32 = vpack.c.bf16 %v3288_v30, %v3287_v29  ;;  %3658 = vmatprep.subr.bf16.mxu1 %v4069_v27  ;;  %v4111_v41 = vpack.c.bf16 %v3290_v39, %v3289_v38  ;;  %v4137_v50 = vrot.slane %v4030_v0, %v309_v47 }
   0x7   :  { %3660 = vmatpush1.bf16.msra.mxu1 %v4082_v31 }
   0x8   :  { %3667 = vmatpush3.bf16.msra.mxu0 %v4084_v32  ;;  %3662 = vmatprep.subr.bf16.mxu1 %v4096_v36 }
   0x9   :  { %3668 = vmatprep.subr.bf16.mxu0 %v3999_v24 }
   0xb   :  { %3664 = vmatpush1.bf16.msra.mxu1 %v4109_v40 }
   0xc   :  { %3670 = vmatpush3.bf16.msra.mxu0 %v4111_v41  ;;  %3672 = vmatprep.subr.bf16.mxu1 %v4069_v27 }
   0xd   :  { %3679 = vmatprep.subr.bf16.mxu0 %v3999_v24 }
  0xd7   :  { %v3469_v7 = vpop.f32.mrb[0].mxu0 }
  0xd8   :  { %v4048_v8 = vadd.f32 %v3469_v7, %v24_v6  ;;  %v102_v9 = vpop.f32.mrb[1].mxu0 }
  0xd9   :  { %v4050_v10 = vadd.f32 %v102_v9, %v24_v6 }
  0xdb   :  { %v3291_v11 = vmul.f32 -1.442695, %v4050_v10 }
  0xdd   :  { %3894 = vpow2.f32 %v3291_v11 }
  0xe7   :  { %v3895_v12 = vpop.eup %3894 }
  0xe8   :  { %v128_v13 = vadd.f32 1.0, %v3895_v12 }
  0xea   :  { %3896 = vrcp.f32 %v128_v13 }
  0xf4   :  { %v3897_v14 = vpop.eup %3896 }
  0xf5   :  { %v131_v15 = vmul.f32 2.0, %v3897_v14  ;;  %v133_v19 = vmul.f32 0.0, %v3897_v14 }
  0xf7   :  { %v3292_v16 = vadd.f32 -1.0, %v131_v15 }
  0xf9   :  { %135 = vrot.lane.b32.xlu0 %v3292_v16, %s3997_s21 }
 0x16b   :  { %v136_v17 = vpop.permute.xlu0 %135 }
 0x16c   :  { %v138_v18 = vmul.f32 %v3897_v14, %v136_v17 }
 0x16e   :  { %140 = vrot.lane.b32.xlu0 %v138_v18, %s3998_s22 }
 0x1e0   :  { %v141_v20 = vpop.permute.xlu0 %140 }
 0x1e1   :  { %v4055_v21 = vadd.f32 %v141_v20, %v133_v19 }
 0x1e3   :  { %3898 = vtanh.f32 %v4055_v21  ;;  %v151_v7 = vsel %vm32_vm0, %v4055_v21, 0.0 }
 0x1ed   :  { %v3899_v42 = vpop.eup %3898 }
 0x1ee   :  { %146 = vrot.lane.b32.xlu1 %v3899_v42, %s3997_s21 }
 0x260   :  { %v147_v43 = vpop.permute.xlu1 %146 }
 0x261   :  { %v149_v44 = vmul.f32 %v3897_v14, %v147_v43 }
 0x263   :  { %v150_v45 = vsel %vm32_vm0, %v149_v44, 0.0 }
 0x264   :  { %153 = vrot.lane.b32.xlu1 %v150_v45, %s3998_s22 }
 0x2d6   :  { %v154_v46 = vpop.permute.xlu1 %153 }
 0x2d7   :  { %3293 = vmatmul.mubr.msk.f32.vlgmr.msra.gmra.mrb[0].mxu1 %vm155_vm3, %v154_v46  ;;  %3479 = vmatmul.mubr.msk.f32.vlgmr.msra.gmra.mrb[2].mxu0 %vm155_vm3, %v154_v46 }
 0x2d8   :  { %3674 = vmatpush1.bf16.msra.mxu1 %v4082_v31  ;;  %3681 = vmatpush3.bf16.msra.mxu0 %v4084_v32 }
 0x2d9   :  { %3676 = vmatprep.subr.bf16.mxu1 %v4096_v36  ;;  %3682 = vmatprep.subr.bf16.mxu0 %v3999_v24 }
 0x2da   :  { %413 = vmatprep.mubr.f32.mxu1 %v4000_v26  ;;  %3489 = vmatprep.mubr.msk.f32.mxu0 %vm4001_vm2, %v4000_v26 }
 0x2dc   :  { %3678 = vmatpush1.bf16.msra.mxu1 %v4109_v40  ;;  %3684 = vmatpush3.bf16.msra.mxu0 %v4111_v41 }
 0x2dd   :  { %3686 = vmatprep.subr.bf16.mxu1 %v4069_v27  ;;  %3693 = vmatprep.subr.bf16.mxu0 %v3999_v24 }
 0x3aa   :  { %v224_v48 = vpop.f32.mrb[0].mxu1  ;;  %v295_v49 = vpop.f32.mrb[2].mxu0 }
 0x3ab   :  { %v300_v51 = vrot.slane %v224_v48, 6  ;;  %v304_v52 = vrot.slane %v295_v49, 2  ;;  %v226_v53 = vpop.f32.mrb[1].mxu1  ;;  %v3480_v54 = vpop.f32.mrb[3].mxu0 }
 0x3ad   :  { %v302_v55 = vadd.f32 %v300_v51, %v4050_v10  ;;  %v306_v56 = vadd.f32 %v304_v52, %v226_v53 }
 0x3af   :  { %v311_v57 = vadd.f32 %v4137_v50, %v306_v56  ;;  %v313_v58 = vrot.slane %v302_v55, 2 }
 0x3b1   :  { %v316_v59 = vrot.slane %v311_v57, 6 }
 0x3b3   :  { %v318_v60 = vsel %vm32_vm0, %v313_v58, %v316_v59 }
 0x3b4   :  { %v3295_v61 = vmul.f32 -1.442695, %v318_v60 }
 0x3b6   :  { %3900 = vpow2.f32 %v3295_v61 }
 0x3c0   :  { %v3901_v62 = vpop.eup %3900 }
 0x3c1   :  { %v322_v63 = vadd.f32 1.0, %v3901_v62 }
 0x3c3   :  { %3902 = vrcp.f32 %v322_v63 }
 0x3cd   :  { %v3903_v1 = vpop.eup %3902 }
 0x3ce   :  { %v325_v2 = vmul.f32 2.0, %v3903_v1  ;;  %v327_v9 = vmul.f32 %v3903_v1, %v151_v7 }
 0x3d0   :  { %v3296_v3 = vadd.f32 -1.0, %v325_v2 }
 0x3d2   :  { %329 = vrot.lane.b32.xlu0 %v3296_v3, %s3997_s21 }
 0x444   :  { %v330_v5 = vpop.permute.xlu0 %329 }
 0x445   :  { %v332_v6 = vmul.f32 %v3903_v1, %v330_v5 }
 0x447   :  { %334 = vrot.lane.b32.xlu1 %v332_v6, %s3998_s22 }
 0x4b9   :  { %v335_v11 = vpop.permute.xlu1 %334 }
 0x4ba   :  { %v337_v12 = vadd.f32 %v335_v11, %v327_v9 }
 0x4bc   :  { %3904 = vtanh.f32 %v337_v12 }
 0x4c6   :  { %v3905_v13 = vpop.eup %3904 }
 0x4c7   :  { %340 = vrot.lane.b32.xlu0 %v3905_v13, %s3997_s21 }
 0x539   :  { %v341_v14 = vpop.permute.xlu0 %340 }
 0x53a   :  { %v343_v15 = vmul.f32 %v3903_v1, %v341_v14 }
 0x53c   :  { %345 = vrot.lane.b32.xlu1 %v343_v15, %s3998_s22 }
 0x5ae   :  { %v346_v16 = vpop.permute.xlu1 %345 }
 0x5af   :  { %3297 = vmatmul.mubr.msk.f32.vlgmr.msra.gmra.mrb[2].mxu1 %vm155_vm3, %v346_v16  ;;  %3490 = vmatmul.mubr.msk.f32.vlgmr.msra.gmra.mrb[4].mxu0 %vm155_vm3, %v346_v16 }
 0x5b0   :  { %3688 = vmatpush1.bf16.msra.mxu1 %v4082_v31  ;;  %3695 = vmatpush3.bf16.msra.mxu0 %v4084_v32 }
 0x5b1   :  { %3690 = vmatprep.subr.bf16.mxu1 %v4096_v36  ;;  %3696 = vmatprep.subr.bf16.mxu0 %v3999_v24 }
 0x5b2   :  { %600 = vmatprep.mubr.f32.mxu1 %v4000_v26  ;;  %3500 = vmatprep.mubr.msk.f32.mxu0 %vm4001_vm2, %v4000_v26 }
 0x5b4   :  { %3692 = vmatpush1.bf16.msra.mxu1 %v4109_v40  ;;  %3698 = vmatpush3.bf16.msra.mxu0 %v4111_v41 }
 0x5b5   :  { %3700 = vmatprep.subr.bf16.mxu1 %v4069_v27  ;;  %3707 = vmatprep.subr.bf16.mxu0 %v3999_v24 }
 0x682   :  { %v415_v17 = vpop.f32.mrb[2].mxu1  ;;  %v486_v18 = vpop.f32.mrb[4].mxu0 }
 0x683   :  { %v491_v19 = vrot.slane %v415_v17, 4  ;;  %v495_v20 = vrot.slane %v486_v18, 2  ;;  %v417_v21 = vpop.f32.mrb[3].mxu1  ;;  %v3491_v22 = vpop.f32.mrb[5].mxu0 }
 0x685   :  { %v493_v23 = vadd.f32 %v491_v19, %v4050_v10  ;;  %v497_v25 = vadd.f32 %v495_v20, %v417_v21 }
 0x687   :  { %v498_v28 = vadd.f32 %v497_v25, %v4137_v50  ;;  %v500_v29 = vrot.slane %v493_v23, 4 }
 0x689   :  { %v503_v30 = vrot.slane %v498_v28, 6 }
 0x68b   :  { %v505_v33 = vsel %vm32_vm0, %v500_v29, %v503_v30 }
 0x68c   :  { %v3299_v34 = vmul.f32 -1.442695, %v505_v33 }
 0x68e   :  { %3906 = vpow2.f32 %v3299_v34 }
 0x698   :  { %v3907_v35 = vpop.eup %3906 }
 0x699   :  { %v509_v37 = vadd.f32 1.0, %v3907_v35 }
 0x69b   :  { %3908 = vrcp.f32 %v509_v37 }
 0x6a5   :  { %v3909_v38 = vpop.eup %3908 }
 0x6a6   :  { %v512_v39 = vmul.f32 2.0, %v3909_v38  ;;  %v514_v45 = vmul.f32 %v3909_v38, %v337_v12 }
 0x6a8   :  { %v3300_v42 = vadd.f32 -1.0, %v512_v39 }
 0x6aa   :  { %516 = vrot.lane.b32.xlu0 %v3300_v42, %s3997_s21 }
 0x71c   :  { %v517_v43 = vpop.permute.xlu0 %516 }
 0x71d   :  { %v519_v44 = vmul.f32 %v3909_v38, %v517_v43 }
 0x71f   :  { %521 = vrot.lane.b32.xlu1 %v519_v44, %s3998_s22 }
 0x791   :  { %v522_v46 = vpop.permute.xlu1 %521 }
 0x792   :  { %v524_v47 = vadd.f32 %v522_v46, %v514_v45 }
 0x794   :  { %3910 = vtanh.f32 %v524_v47 }
 0x79e   :  { %v3911_v48 = vpop.eup %3910 }
 0x79f   :  { %527 = vrot.lane.b32.xlu0 %v3911_v48, %s3997_s21 }
 0x811   :  { %v528_v49 = vpop.permute.xlu0 %527 }
 0x812   :  { %v530_v51 = vmul.f32 %v3909_v38, %v528_v49 }
 0x814   :  { %532 = vrot.lane.b32.xlu1 %v530_v51, %s3998_s22 }
 0x886   :  { %v533_v52 = vpop.permute.xlu1 %532 }
 0x887   :  { %3301 = vmatmul.mubr.msk.f32.vlgmr.msra.gmra.mrb[4].mxu1 %vm155_vm3, %v533_v52  ;;  %3501 = vmatmul.mubr.msk.f32.vlgmr.msra.gmra.mrb[6].mxu0 %vm155_vm3, %v533_v52 }
 0x888   :  { %3702 = vmatpush1.bf16.msra.mxu1 %v4082_v31  ;;  %3709 = vmatpush3.bf16.msra.mxu0 %v4084_v32 }
 0x889   :  { %3704 = vmatprep.subr.bf16.mxu1 %v4096_v36  ;;  %3710 = vmatprep.subr.bf16.mxu0 %v3999_v24 }
 0x88a   :  { %787 = vmatprep.mubr.f32.mxu1 %v4000_v26  ;;  %3511 = vmatprep.mubr.msk.f32.mxu0 %vm4001_vm2, %v4000_v26 }
 0x88c   :  { %3706 = vmatpush1.bf16.msra.mxu1 %v4109_v40  ;;  %3712 = vmatpush3.bf16.msra.mxu0 %v4111_v41 }
 0x88d   :  { %3714 = vmatprep.subr.bf16.mxu1 %v4069_v27  ;;  %3721 = vmatprep.subr.bf16.mxu0 %v3999_v24 }
 0x95a   :  { %v602_v53 = vpop.f32.mrb[4].mxu1  ;;  %v673_v54 = vpop.f32.mrb[6].mxu0 }
 0x95b   :  { %v678_v55 = vrot.slane %v602_v53, 2  ;;  %v682_v56 = vrot.slane %v673_v54, 2  ;;  %v604_v57 = vpop.f32.mrb[5].mxu1  ;;  %v3502_v58 = vpop.f32.mrb[7].mxu0 }
 0x95d   :  { %v680_v59 = vadd.f32 %v678_v55, %v4050_v10  ;;  %v684_v60 = vadd.f32 %v682_v56, %v604_v57 }
 0x95f   :  { %v685_v61 = vadd.f32 %v684_v60, %v4137_v50  ;;  %v687_v62 = vrot.slane %v680_v59, 6 }
 0x961   :  { %v690_v63 = vrot.slane %v685_v61, 6 }
 0x963   :  { %v692_v1 = vsel %vm32_vm0, %v687_v62, %v690_v63 }
 0x964   :  { %v3303_v2 = vmul.f32 -1.442695, %v692_v1 }
 0x966   :  { %3912 = vpow2.f32 %v3303_v2 }
 0x970   :  { %v3913_v3 = vpop.eup %3912 }
 0x971   :  { %v696_v5 = vadd.f32 1.0, %v3913_v3 }
 0x973   :  { %3914 = vrcp.f32 %v696_v5 }
 0x97d   :  { %v3915_v6 = vpop.eup %3914 }
 0x97e   :  { %v699_v7 = vmul.f32 2.0, %v3915_v6  ;;  %v701_v10 = vmul.f32 %v3915_v6, %v524_v47 }
 0x980   :  { %v3304_v9 = vadd.f32 -1.0, %v699_v7 }
 0x982   :  { %703 = vrot.lane.b32.xlu0 %v3304_v9, %s3997_s21 }
 0x9f4   :  { %v704_v11 = vpop.permute.xlu0 %703 }
 0x9f5   :  { %v706_v12 = vmul.f32 %v3915_v6, %v704_v11 }
 0x9f7   :  { %708 = vrot.lane.b32.xlu1 %v706_v12, %s3998_s22 }
 0xa69   :  { %v709_v13 = vpop.permute.xlu1 %708 }
 0xa6a   :  { %v711_v14 = vadd.f32 %v709_v13, %v701_v10 }
 0xa6c   :  { %3916 = vtanh.f32 %v711_v14 }
 0xa76   :  { %v3917_v15 = vpop.eup %3916 }
 0xa77   :  { %714 = vrot.lane.b32.xlu0 %v3917_v15, %s3997_s21 }
 0xae9   :  { %v715_v16 = vpop.permute.xlu0 %714 }
 0xaea   :  { %v717_v17 = vmul.f32 %v3915_v6, %v715_v16 }
 0xaec   :  { %719 = vrot.lane.b32.xlu1 %v717_v17, %s3998_s22 }
 0xb5e   :  { %v720_v18 = vpop.permute.xlu1 %719 }
 0xb5f   :  { %3305 = vmatmul.mubr.msk.f32.vlgmr.msra.gmra.mrb[6].mxu1 %vm155_vm3, %v720_v18  ;;  %3512 = vmatmul.mubr.msk.f32.vlgmr.msra.gmra.mrb[8].mxu0 %vm155_vm3, %v720_v18 }
 0xb60   :  { %3716 = vmatpush1.bf16.msra.mxu1 %v4082_v31  ;;  %3723 = vmatpush3.bf16.msra.mxu0 %v4084_v32 }
 0xb61   :  { %3718 = vmatprep.subr.bf16.mxu1 %v4096_v36  ;;  %3724 = vmatprep.subr.bf16.mxu0 %v3999_v24 }
 0xb62   :  { %968 = vmatprep.mubr.f32.mxu1 %v4000_v26  ;;  %3522 = vmatprep.mubr.msk.f32.mxu0 %vm4001_vm2, %v4000_v26 }
 0xb64   :  { %3720 = vmatpush1.bf16.msra.mxu1 %v4109_v40  ;;  %3726 = vmatpush3.bf16.msra.mxu0 %v4111_v41 }
 0xb65   :  { %3728 = vmatprep.subr.bf16.mxu1 %v4069_v27  ;;  %3735 = vmatprep.subr.bf16.mxu0 %v3999_v24 }
 0xc32   :  { %v789_v19 = vpop.f32.mrb[6].mxu1  ;;  %v860_v20 = vpop.f32.mrb[8].mxu0 }
 0xc33   :  { %v866_v21 = vrot.slane %v860_v20, 2  ;;  %v791_v22 = vpop.f32.mrb[7].mxu1  ;;  %v3513_v23 = vpop.f32.mrb[9].mxu0  ;;  %v864_v29 = vadd.f32 %v789_v19, %v4048_v8 }
 0xc35   :  { %v868_v25 = vadd.f32 %v866_v21, %v791_v22 }
 0xc37   :  { %v869_v28 = vadd.f32 %v868_v25, %v4137_v50 }
 0xc39   :  { %v871_v30 = vrot.slane %v869_v28, 6 }
 0xc3b   :  { %v873_v33 = vsel %vm32_vm0, %v864_v29, %v871_v30 }
 0xc3c   :  { %v3307_v34 = vmul.f32 -1.442695, %v873_v33 }
 0xc3e   :  { %3918 = vpow2.f32 %v3307_v34 }
 0xc48   :  { %v3919_v35 = vpop.eup %3918 }
 0xc49   :  { %v877_v37 = vadd.f32 1.0, %v3919_v35 }
 0xc4b   :  { %3920 = vrcp.f32 %v877_v37 }
 0xc55   :  { %v3921_v38 = vpop.eup %3920 }
 0xc56   :  { %v880_v39 = vmul.f32 2.0, %v3921_v38  ;;  %v882_v45 = vmul.f32 %v3921_v38, %v711_v14 }
 0xc58   :  { %v3308_v42 = vadd.f32 -1.0, %v880_v39 }
 0xc5a   :  { %884 = vrot.lane.b32.xlu0 %v3308_v42, %s3997_s21 }
 0xccc   :  { %v885_v43 = vpop.permute.xlu0 %884 }
 0xccd   :  { %v887_v44 = vmul.f32 %v3921_v38, %v885_v43 }
 0xccf   :  { %889 = vrot.lane.b32.xlu1 %v887_v44, %s3998_s22 }
 0xd41   :  { %v890_v46 = vpop.permute.xlu1 %889 }
 0xd42   :  { %v892_v47 = vadd.f32 %v890_v46, %v882_v45 }
 0xd44   :  { %3922 = vtanh.f32 %v892_v47 }
 0xd4e   :  { %v3923_v48 = vpop.eup %3922 }
 0xd4f   :  { %895 = vrot.lane.b32.xlu0 %v3923_v48, %s3997_s21 }
 0xdc1   :  { %v896_v49 = vpop.permute.xlu0 %895 }
 0xdc2   :  { %v898_v51 = vmul.f32 %v3921_v38, %v896_v49 }
 0xdc4   :  { %900 = vrot.lane.b32.xlu1 %v898_v51, %s3998_s22 }
 0xe36   :  { %v901_v52 = vpop.permute.xlu1 %900 }
 0xe37   :  { %3309 = vmatmul.mubr.msk.f32.vlgmr.msra.gmra.mrb[8].mxu1 %vm155_vm3, %v901_v52  ;;  %3523 = vmatmul.mubr.msk.f32.vlgmr.msra.gmra.mrb[10].mxu0 %vm155_vm3, %v901_v52 }
 0xe38   :  { %3730 = vmatpush1.bf16.msra.mxu1 %v4082_v31  ;;  %3737 = vmatpush3.bf16.msra.mxu0 %v4084_v32 }
 0xe39   :  { %3732 = vmatprep.subr.bf16.mxu1 %v4096_v36  ;;  %3738 = vmatprep.subr.bf16.mxu0 %v3999_v24 }
 0xe3a   :  { %1155 = vmatprep.mubr.f32.mxu1 %v4000_v26  ;;  %3533 = vmatprep.mubr.msk.f32.mxu0 %vm4001_vm2, %v4000_v26 }
 0xe3c   :  { %3734 = vmatpush1.bf16.msra.mxu1 %v4109_v40  ;;  %3740 = vmatpush3.bf16.msra.mxu0 %v4111_v41 }
 0xe3d   :  { %3742 = vmatprep.subr.bf16.mxu1 %v4069_v27  ;;  %3749 = vmatprep.subr.bf16.mxu0 %v3999_v24 }
 0xf0a   :  { %v970_v53 = vpop.f32.mrb[8].mxu1  ;;  %v1041_v54 = vpop.f32.mrb[10].mxu0 }
 0xf0b   :  { %v1046_v55 = vrot.slane %v970_v53, 6  ;;  %v1050_v56 = vrot.slane %v1041_v54, 2  ;;  %v972_v57 = vpop.f32.mrb[9].mxu1  ;;  %v3524_v58 = vpop.f32.mrb[11].mxu0 }
 0xf0d   :  { %v1048_v59 = vadd.f32 %v1046_v55, %v4048_v8  ;;  %v1052_v60 = vadd.f32 %v1050_v56, %v972_v57 }
 0xf0f   :  { %v1053_v61 = vadd.f32 %v1052_v60, %v4137_v50  ;;  %v1055_v62 = vrot.slane %v1048_v59, 2 }
 0xf11   :  { %v1058_v63 = vrot.slane %v1053_v61, 6 }
 0xf13   :  { %v1060_v1 = vsel %vm32_vm0, %v1055_v62, %v1058_v63 }
 0xf14   :  { %v3311_v2 = vmul.f32 -1.442695, %v1060_v1 }
 0xf16   :  { %3924 = vpow2.f32 %v3311_v2 }
 0xf20   :  { %v3925_v3 = vpop.eup %3924 }
 0xf21   :  { %v1064_v5 = vadd.f32 1.0, %v3925_v3 }
 0xf23   :  { %3926 = vrcp.f32 %v1064_v5 }
 0xf2d   :  { %v3927_v6 = vpop.eup %3926 }
 0xf2e   :  { %v1067_v7 = vmul.f32 2.0, %v3927_v6  ;;  %v1069_v10 = vmul.f32 %v3927_v6, %v892_v47 }
 0xf30   :  { %v3312_v9 = vadd.f32 -1.0, %v1067_v7 }
 0xf32   :  { %1071 = vrot.lane.b32.xlu0 %v3312_v9, %s3997_s21 }
 0xfa4   :  { %v1072_v11 = vpop.permute.xlu0 %1071 }
 0xfa5   :  { %v1074_v12 = vmul.f32 %v3927_v6, %v1072_v11 }
 0xfa7   :  { %1076 = vrot.lane.b32.xlu1 %v1074_v12, %s3998_s22 }
0x1019   :  { %v1077_v13 = vpop.permute.xlu1 %1076 }
0x101a   :  { %v1079_v14 = vadd.f32 %v1077_v13, %v1069_v10 }
0x101c   :  { %3928 = vtanh.f32 %v1079_v14 }
0x1026   :  { %v3929_v15 = vpop.eup %3928 }
0x1027   :  { %1082 = vrot.lane.b32.xlu0 %v3929_v15, %s3997_s21 }
0x1099   :  { %v1083_v16 = vpop.permute.xlu0 %1082 }
0x109a   :  { %v1085_v17 = vmul.f32 %v3927_v6, %v1083_v16 }
0x109c   :  { %1087 = vrot.lane.b32.xlu1 %v1085_v17, %s3998_s22 }
0x110e   :  { %v1088_v18 = vpop.permute.xlu1 %1087 }
0x110f   :  { %3313 = vmatmul.mubr.msk.f32.vlgmr.msra.gmra.mrb[10].mxu1 %vm155_vm3, %v1088_v18  ;;  %3534 = vmatmul.mubr.msk.f32.vlgmr.msra.gmra.mrb[12].mxu0 %vm155_vm3, %v1088_v18 }
0x1110   :  { %3744 = vmatpush1.bf16.msra.mxu1 %v4082_v31  ;;  %3751 = vmatpush3.bf16.msra.mxu0 %v4084_v32 }
0x1111   :  { %3746 = vmatprep.subr.bf16.mxu1 %v4096_v36  ;;  %3752 = vmatprep.subr.bf16.mxu0 %v3999_v24 }
0x1112   :  { %1342 = vmatprep.mubr.f32.mxu1 %v4000_v26  ;;  %3544 = vmatprep.mubr.msk.f32.mxu0 %vm4001_vm2, %v4000_v26 }
0x1114   :  { %3748 = vmatpush1.bf16.msra.mxu1 %v4109_v40  ;;  %3754 = vmatpush3.bf16.msra.mxu0 %v4111_v41 }
0x1115   :  { %3756 = vmatprep.subr.bf16.mxu1 %v4069_v27  ;;  %3763 = vmatprep.subr.bf16.mxu0 %v3999_v24 }
0x11e2   :  { %v1157_v19 = vpop.f32.mrb[10].mxu1  ;;  %v1228_v20 = vpop.f32.mrb[12].mxu0 }
0x11e3   :  { %v1233_v21 = vrot.slane %v1157_v19, 4  ;;  %v1237_v22 = vrot.slane %v1228_v20, 2  ;;  %v1159_v23 = vpop.f32.mrb[11].mxu1  ;;  %v3535_v25 = vpop.f32.mrb[13].mxu0 }
0x11e5   :  { %v1235_v28 = vadd.f32 %v1233_v21, %v4048_v8  ;;  %v1239_v29 = vadd.f32 %v1237_v22, %v1159_v23 }
0x11e7   :  { %v1240_v30 = vadd.f32 %v1239_v29, %v4137_v50  ;;  %v1242_v33 = vrot.slane %v1235_v28, 4 }
0x11e9   :  { %v1245_v34 = vrot.slane %v1240_v30, 6 }
0x11eb   :  { %v1247_v35 = vsel %vm32_vm0, %v1242_v33, %v1245_v34 }
0x11ec   :  { %v3315_v37 = vmul.f32 -1.442695, %v1247_v35 }
0x11ee   :  { %3930 = vpow2.f32 %v3315_v37 }
0x11f8   :  { %v3931_v27 = vpop.eup %3930 }
0x11f9   :  { %v1251_v38 = vadd.f32 1.0, %v3931_v27 }
0x11fb   :  { %3932 = vrcp.f32 %v1251_v38  ;;  %v3338_v38 = vld [vmem:[%s4566_s2 + $0xa8] sm:$0xff] }
0x1205   :  { %v3933_v39 = vpop.eup %3932 }
0x1206   :  { %v1254_v42 = vmul.f32 2.0, %v3933_v39  ;;  %v1256_v46 = vmul.f32 %v3933_v39, %v1079_v14 }
0x1208   :  { %v3316_v43 = vadd.f32 -1.0, %v1254_v42 }
0x120a   :  { %1258 = vrot.lane.b32.xlu0 %v3316_v43, %s3997_s21  ;;  %v3330_v43 = vld [vmem:[%s4566_s2 + $0xc8] sm:$0xff] }
0x127c   :  { %v1259_v44 = vpop.permute.xlu0 %1258 }
0x127d   :  { %v1261_v45 = vmul.f32 %v3933_v39, %v1259_v44  ;;  %v3325_v44 = vld [vmem:[%s4566_s2 + $0x60] sm:$0xff] }
0x127f   :  { %1263 = vrot.lane.b32.xlu1 %v1261_v45, %s3998_s22  ;;  %v3326_v45 = vld [vmem:[%s4566_s2 + $0x68] sm:$0xff] }
0x12f1   :  { %v1264_v47 = vpop.permute.xlu1 %1263 }
0x12f2   :  { %v1266_v48 = vadd.f32 %v1264_v47, %v1256_v46  ;;  %v4305_v47 = vpack.c.bf16 %v3326_v45, %v3325_v44 }
0x12f4   :  { %3934 = vtanh.f32 %v1266_v48 }
0x12fe   :  { %v3935_v49 = vpop.eup %3934 }
0x12ff   :  { %1269 = vrot.lane.b32.xlu0 %v3935_v49, %s3997_s21  ;;  %v3340_v49 = vld [vmem:[%s4566_s2 + $0xb8] sm:$0xff] }
0x1371   :  { %v1270_v51 = vpop.permute.xlu0 %1269 }
0x1372   :  { %v1272_v52 = vmul.f32 %v3933_v39, %v1270_v51  ;;  %v3329_v39 = vld [vmem:[%s4566_s2 + $0xc0] sm:$0xff]  ;;  %v3331_v51 = vld [vmem:[%s4566_s2 + $0xd0] sm:$0xff] }
0x1373   :  { %v4303_v46 = vpack.c.bf16 %v3330_v43, %v3329_v39 }
0x1374   :  { %1274 = vrot.lane.b32.xlu1 %v1272_v52, %s3998_s22 }
0x13e6   :  { %v1275_v53 = vpop.permute.xlu1 %1274 }
0x13e7   :  { %3317 = vmatmul.mubr.msk.f32.vlgmr.msra.gmra.mrb[12].mxu1 %vm155_vm3, %v1275_v53  ;;  %3545 = vmatmul.mubr.msk.f32.vlgmr.msra.gmra.mrb[14].mxu0 %vm155_vm3, %v1275_v53  ;;  %v3332_v53 = vld [vmem:[%s4566_s2 + $0xd8] sm:$0xff] }
0x13e8   :  { %3758 = vmatpush1.bf16.msra.mxu1 %v4082_v31  ;;  %3765 = vmatpush3.bf16.msra.mxu0 %v4084_v32 }
0x13e9   :  { %3760 = vmatprep.subr.bf16.mxu1 %v4096_v36  ;;  %3766 = vmatprep.subr.bf16.mxu0 %v3999_v24 }
0x13ea   :  { %1529 = vmatprep.mubr.f32.mxu1 %v4000_v26  ;;  %3555 = vmatprep.mubr.msk.f32.mxu0 %vm4001_vm2, %v4000_v26 }
0x13ec   :  { %3762 = vmatpush1.bf16.msra.mxu1 %v4109_v40  ;;  %3768 = vmatpush3.bf16.msra.mxu0 %v4111_v41 }
0x13ed   :  { %3769 = vmatprep.subr.bf16.mxu1 %v3999_v24  ;;  %3776 = vmatprep.subr.bf16.mxu0 %v4303_v46 }
0x14ba   :  { %v1344_v54 = vpop.f32.mrb[12].mxu1  ;;  %v1415_v55 = vpop.f32.mrb[14].mxu0 }
0x14bb   :  { %v1420_v31 = vrot.slane %v1344_v54, 2  ;;  %v1424_v56 = vrot.slane %v1415_v55, 2  ;;  %v1346_v32 = vpop.f32.mrb[13].mxu1  ;;  %v3546_v57 = vpop.f32.mrb[15].mxu0  ;;  %v4321_v54 = vpack.c.bf16 %v3332_v53, %v3331_v51 }
0x14bd   :  { %v1422_v36 = vadd.f32 %v1420_v31, %v4048_v8  ;;  %v1426_v58 = vadd.f32 %v1424_v56, %v1346_v32  ;;  %v3327_v31 = vld [vmem:[%s4566_s2 + $0x70] sm:$0xff]  ;;  %v3328_v56 = vld [vmem:[%s4566_s2 + $0x78] sm:$0xff] }
0x14be   :  { %v4333_v32 = vpack.c.bf16 %v3328_v56, %v3327_v31 }
0x14bf   :  { %v1427_v59 = vadd.f32 %v1426_v58, %v4137_v50  ;;  %v1429_v60 = vrot.slane %v1422_v36, 6 }
0x14c1   :  { %v1432_v61 = vrot.slane %v1427_v59, 6 }
0x14c3   :  { %v1434_v62 = vsel %vm32_vm0, %v1429_v60, %v1432_v61 }
0x14c4   :  { %v3319_v40 = vmul.f32 -1.442695, %v1434_v62  ;;  %v1660_v62 = vsub.s32 4, %v4044_v4 }
0x14c6   :  { %3936 = vpow2.f32 %v3319_v40  ;;  %v1661_v40 = vrot.slane %v4030_v0, %v1660_v62 }
0x14d0   :  { %v3937_v41 = vpop.eup %3936 }
0x14d1   :  { %v1438_v63 = vadd.f32 1.0, %v3937_v41 }
0x14d3   :  { %3938 = vrcp.f32 %v1438_v63 }
0x14dd   :  { %v3939_v1 = vpop.eup %3938 }
0x14de   :  { %v1441_v2 = vmul.f32 2.0, %v3939_v1  ;;  %v1443_v8 = vmul.f32 %v3939_v1, %v1266_v48  ;;  %v3339_v48 = vld [vmem:[%s4566_s2 + $0xb0] sm:$0xff] }
0x14df   :  { %v3773_v52 = vpack.c.bf16 %v3340_v49, %v3339_v48 }
0x14e0   :  { %v3320_v3 = vadd.f32 -1.0, %v1441_v2 }
0x14e2   :  { %1445 = vrot.lane.b32.xlu0 %v3320_v3, %s3997_s21 }
0x1554   :  { %v1446_v5 = vpop.permute.xlu0 %1445 }
0x1555   :  { %v1448_v6 = vmul.f32 %v3939_v1, %v1446_v5 }
0x1557   :  { %1450 = vrot.lane.b32.xlu1 %v1448_v6, %s3998_s22 }
0x15c9   :  { %v1451_v7 = vpop.permute.xlu1 %1450 }
0x15ca   :  { %v4265_v9 = vadd.f32 %v1451_v7, %v1443_v8 }
0x15cc   :  { %3940 = vtanh.f32 %v4265_v9  ;;  %v1619_v34 = vrot.slane %v4265_v9, 2 }
0x15d6   :  { %v3941_v11 = vpop.eup %3940 }
0x15d7   :  { %1456 = vrot.lane.b32.xlu0 %v3941_v11, %s3997_s21 }
0x1649   :  { %v1457_v12 = vpop.permute.xlu0 %1456 }
0x164a   :  { %v4269_v10 = vmul.f32 %v3939_v1, %v1457_v12 }
0x164c   :  { %1461 = vrot.lane.b32.xlu1 %v4269_v10, %s3998_s22 }
0x16be   :  { %v1462_v13 = vpop.permute.xlu1 %1461 }
0x16bf   :  { %3321 = vmatmul.mubr.msk.f32.vlgmr.msra.gmra.mrb[14].mxu1 %vm155_vm3, %v1462_v13  ;;  %3556 = vmatmul.mubr.msk.f32.vlgmr.msra.gmra.mrb[16].mxu0 %vm155_vm3, %v1462_v13 }
0x16c0   :  { %3566 = vmatprep.mubr.msk.f32.mxu1 %vm4001_vm2, %v4000_v26  ;;  %1813 = vmatprep.mubr.f32.mxu0 %v4000_v26 }
0x16c1   :  { %3778 = vmatpush1.bf16.msra.mxu0 %v4305_v47 }
0x16c2   :  { %3780 = vmatprep.subr.bf16.mxu0 %v4321_v54 }
0x16c5   :  { %3782 = vmatpush1.bf16.msra.mxu0 %v4333_v32 }
0x16c6   :  { %3791 = vmatprep.subr.bf16.mxu0 %v3999_v24 }
0x1792   :  { %v1531_v14 = vpop.f32.mrb[14].mxu1  ;;  %v1601_v15 = vpop.f32.mrb[16].mxu0 }
0x1793   :  { %v1606_v16 = vrot.slane %v1601_v15, 2  ;;  %v1532_v17 = vpop.f32.mrb[15].mxu1  ;;  %v3557_v18 = vpop.f32.mrb[17].mxu0 }
0x1795   :  { %v1608_v19 = vadd.f32 %v1606_v16, %v1532_v17 }
0x1797   :  { %v1609_v20 = vadd.f32 %v1608_v19, %v4137_v50  ;;  %v3337_v50 = vld [vmem:[%s4566_s2 + $0xa0] sm:$0xff] }
0x1798   :  { %v3770_v42 = vpack.c.bf16 %v3338_v38, %v3337_v50  ;;  %v3333_v19 = vld [vmem:[%s4566_s2 + $0x80] sm:$0xff] }
0x1799   :  { %v3323_v21 = vmul.f32 -1.442695, %v1609_v20  ;;  %v3334_v20 = vld [vmem:[%s4566_s2 + $0x88] sm:$0xff] }
0x179a   :  { %3771 = vmatpush3.bf16.msra.mxu1 %v3770_v42 }
0x179b   :  { %3942 = vpow2.f32 %v3323_v21  ;;  %3772 = vmatprep.subr.bf16.mxu1 %v3999_v24  ;;  %v3335_v21 = vld [vmem:[%s4566_s2 + $0x90] sm:$0xff] }
0x179e   :  { %3774 = vmatpush3.bf16.msra.mxu1 %v3773_v52 }
0x179f   :  { %3784 = vmatprep.subr.bf16.mxu1 %v4303_v46 }
0x17a5   :  { %v3943_v22 = vpop.eup %3942 }
0x17a6   :  { %v1613_v23 = vadd.f32 1.0, %v3943_v22  ;;  %v4373_v22 = vpack.c.bf16 %v3334_v20, %v3333_v19 }
0x17a8   :  { %3944 = vrcp.f32 %v1613_v23 }
0x17b2   :  { %v3945_v25 = vpop.eup %3944 }
0x17b3   :  { %v1616_v28 = vmul.f32 2.0, %v3945_v25  ;;  %v1621_v35 = vmul.f32 %v3945_v25, %v1619_v34  ;;  %v2000_v34 = vsub.s32 5, %v4044_v4 }
0x17b5   :  { %v3324_v29 = vadd.f32 -1.0, %v1616_v28 }
0x17b7   :  { %1623 = vrot.lane.b32.xlu0 %v3324_v29, %s3997_s21 }
0x1829   :  { %v1624_v30 = vpop.permute.xlu0 %1623 }
0x182a   :  { %v1626_v33 = vmul.f32 %v3945_v25, %v1624_v30 }
0x182c   :  { %1628 = vrot.lane.b32.xlu1 %v1626_v33, %s3998_s22 }
0x189e   :  { %v1629_v37 = vpop.permute.xlu1 %1628 }
0x189f   :  { %v4282_v27 = vadd.f32 %v1629_v37, %v1621_v35 }
0x18a1   :  { %3946 = vtanh.f32 %v4282_v27  ;;  %v1741_v14 = vrot.slane %v4282_v27, 6  ;;  %v3996_v27 = vld [vmem:[%s4564_s1] sm:$0x3f] }
0x18a2   :  { %v4404_v50 = vrot.slane %v3996_v27, %v2000_v34 }
0x18a3   :  { %v1743_v15 = vsel %vm32_vm0, %v4265_v9, %v1741_v14  ;;  %v3336_v9 = vld [vmem:[%s4566_s2 + $0x98] sm:$0xff] }
0x18a4   :  { %v4379_v23 = vpack.c.bf16 %v3336_v9, %v3335_v21 }
0x18ab   :  { %v3947_v55 = vpop.eup %3946 }
0x18ac   :  { %1634 = vrot.lane.b32.xlu0 %v3947_v55, %s3997_s21 }
0x191e   :  { %v1635_v57 = vpop.permute.xlu0 %1634 }
0x191f   :  { %v4337_v36 = vmul.f32 %v3945_v25, %v1635_v57 }
0x1921   :  { %v1737_v58 = vrot.slane %v4337_v36, 6  ;;  %1663 = vrot.lane.b32.xlu1 %v4337_v36, %s3998_s22 }
0x1923   :  { %v1739_v59 = vsel %vm32_vm0, %v4269_v10, %v1737_v58 }
0x1924   :  { %1745 = vrot.lane.b32.xlu0 %v1739_v59, %s3998_s22 }
0x1993   :  { %v1664_v60 = vpop.permute.xlu1 %1663 }
0x1994   :  { %3567 = vmatmul.mubr.msk.f32.vlgmr.msra.gmra.mrb[16].mxu1 %vm155_vm3, %v1664_v60 }
0x1995   :  { %3786 = vmatpush1.bf16.msra.mxu1 %v4305_v47  ;;  %1916 = vmatprep.mubr.f32.mxu1 %v4000_v26 }
0x1996   :  { %v1746_v61 = vpop.permute.xlu0 %1745  ;;  %3788 = vmatprep.subr.bf16.mxu1 %v4321_v54 }
0x1997   :  { %3342 = vmatmul.mubr.msk.f32.vlgmr.msra.gmra.mrb[18].mxu0 %vm155_vm3, %v1746_v61 }
0x1998   :  { %3577 = vmatprep.mubr.msk.f32.mxu0 %vm4001_vm2, %v4000_v26  ;;  %3793 = vmatpush3.bf16.msra.mxu0 %v4373_v22 }
0x1999   :  { %3790 = vmatpush1.bf16.msra.mxu1 %v4333_v32  ;;  %3794 = vmatprep.subr.bf16.mxu0 %v3999_v24 }
0x199a   :  { %3798 = vmatprep.subr.bf16.mxu1 %v4303_v46 }
0x199c   :  { %3796 = vmatpush3.bf16.msra.mxu0 %v4379_v23 }
0x199d   :  { %3805 = vmatprep.subr.bf16.mxu0 %v3999_v24 }
0x1a67   :  { %v1733_v41 = vpop.f32.mrb[16].mxu1 }
0x1a68   :  { %v4356_v63 = vadd.f32 %v1733_v41, %v1661_v40  ;;  %v3568_v1 = vpop.f32.mrb[17].mxu1 }
0x1a6a   :  { %v1815_v2 = vpop.f32.mrb[18].mxu0 }
0x1a6b   :  { %v1819_v3 = vadd.f32 %v1815_v2, %v4356_v63  ;;  %v1817_v5 = vpop.f32.mrb[19].mxu0 }
0x1a6d   :  { %v3343_v6 = vmul.f32 -1.442695, %v1819_v3 }
0x1a6f   :  { %3948 = vpow2.f32 %v3343_v6 }
0x1a79   :  { %v3949_v8 = vpop.eup %3948 }
0x1a7a   :  { %v1823_v7 = vadd.f32 1.0, %v3949_v8 }
0x1a7c   :  { %3950 = vrcp.f32 %v1823_v7 }
0x1a86   :  { %v3951_v11 = vpop.eup %3950 }
0x1a87   :  { %v1826_v12 = vmul.f32 2.0, %v3951_v11  ;;  %v1828_v16 = vmul.f32 %v3951_v11, %v1743_v15 }
0x1a89   :  { %v3344_v10 = vadd.f32 -1.0, %v1826_v12 }
0x1a8b   :  { %1830 = vrot.lane.b32.xlu1 %v3344_v10, %s3997_s21 }
0x1afd   :  { %v1831_v13 = vpop.permute.xlu1 %1830 }
0x1afe   :  { %v1833_v0 = vmul.f32 %v3951_v11, %v1831_v13 }
0x1b00   :  { %1835 = vrot.lane.b32.xlu0 %v1833_v0, %s3998_s22 }
0x1b72   :  { %v1836_v17 = vpop.permute.xlu0 %1835 }
0x1b73   :  { %v1838_v18 = vadd.f32 %v1836_v17, %v1828_v16 }
0x1b75   :  { %3952 = vtanh.f32 %v1838_v18  ;;  %v1846_v58 = vsel %vm32_vm0, %v1838_v18, %v1743_v15 }
0x1b7f   :  { %v3953_v25 = vpop.eup %3952 }
0x1b80   :  { %1841 = vrot.lane.b32.xlu1 %v3953_v25, %s3997_s21 }
0x1bf2   :  { %v1842_v28 = vpop.permute.xlu1 %1841 }
0x1bf3   :  { %v1844_v29 = vmul.f32 %v3951_v11, %v1842_v28 }
0x1bf5   :  { %v1845_v30 = vsel %vm32_vm0, %v1844_v29, %v1739_v59 }
0x1bf6   :  { %1848 = vrot.lane.b32.xlu0 %v1845_v30, %s3998_s22 }
0x1c68   :  { %v1849_v33 = vpop.permute.xlu0 %1848 }
0x1c69   :  { %3345 = vmatmul.mubr.msk.f32.vlgmr.msra.gmra.mrb[18].mxu1 %vm155_vm3, %v1849_v33  ;;  %3578 = vmatmul.mubr.msk.f32.vlgmr.msra.gmra.mrb[20].mxu0 %vm155_vm3, %v1849_v33 }
0x1c6a   :  { %3800 = vmatpush1.bf16.msra.mxu1 %v4305_v47  ;;  %3807 = vmatpush3.bf16.msra.mxu0 %v4373_v22 }
0x1c6b   :  { %3802 = vmatprep.subr.bf16.mxu1 %v4321_v54  ;;  %3808 = vmatprep.subr.bf16.mxu0 %v3999_v24 }
0x1c6c   :  { %2101 = vmatprep.mubr.f32.mxu1 %v4000_v26  ;;  %3588 = vmatprep.mubr.msk.f32.mxu0 %vm4001_vm2, %v4000_v26 }
0x1c6e   :  { %3804 = vmatpush1.bf16.msra.mxu1 %v4333_v32  ;;  %3810 = vmatpush3.bf16.msra.mxu0 %v4379_v23 }
0x1c6f   :  { %3812 = vmatprep.subr.bf16.mxu1 %v4303_v46  ;;  %3819 = vmatprep.subr.bf16.mxu0 %v3999_v24 }
0x1d3c   :  { %v1918_v35 = vpop.f32.mrb[18].mxu1  ;;  %v1989_v37 = vpop.f32.mrb[20].mxu0 }
0x1d3d   :  { %v1995_v38 = vrot.slane %v1989_v37, 2  ;;  %v1920_v39 = vpop.f32.mrb[19].mxu1  ;;  %v3579_v42 = vpop.f32.mrb[21].mxu0  ;;  %v1993_v45 = vadd.f32 %v1918_v35, %v4356_v63 }
0x1d3f   :  { %v1997_v43 = vadd.f32 %v1995_v38, %v1920_v39 }
0x1d41   :  { %v2002_v44 = vadd.f32 %v4404_v50, %v1997_v43 }
0x1d43   :  { %v2004_v48 = vrot.slane %v2002_v44, 6 }
0x1d45   :  { %v2006_v49 = vsel %vm32_vm0, %v1993_v45, %v2004_v48 }
0x1d46   :  { %v3347_v4 = vmul.f32 -1.442695, %v2006_v49 }
0x1d48   :  { %3954 = vpow2.f32 %v3347_v4 }
0x1d52   :  { %v3955_v51 = vpop.eup %3954 }
0x1d53   :  { %v2010_v52 = vadd.f32 1.0, %v3955_v51 }
0x1d55   :  { %3956 = vrcp.f32 %v2010_v52 }
0x1d5f   :  { %v3957_v53 = vpop.eup %3956 }
0x1d60   :  { %v2013_v55 = vmul.f32 2.0, %v3957_v53  ;;  %v2015_v59 = vmul.f32 %v3957_v53, %v1846_v58 }
0x1d62   :  { %v3348_v31 = vadd.f32 -1.0, %v2013_v55 }
0x1d64   :  { %2017 = vrot.lane.b32.xlu1 %v3348_v31, %s3997_s21 }
0x1dd6   :  { %v2018_v56 = vpop.permute.xlu1 %2017 }
0x1dd7   :  { %v2020_v57 = vmul.f32 %v3957_v53, %v2018_v56 }
0x1dd9   :  { %2022 = vrot.lane.b32.xlu0 %v2020_v57, %s3998_s22 }
0x1e4b   :  { %v2023_v60 = vpop.permute.xlu0 %2022 }
0x1e4c   :  { %v2025_v61 = vadd.f32 %v2023_v60, %v2015_v59 }
0x1e4e   :  { %3958 = vtanh.f32 %v2025_v61 }
0x1e58   :  { %v3959_v62 = vpop.eup %3958 }
0x1e59   :  { %2028 = vrot.lane.b32.xlu1 %v3959_v62, %s3997_s21 }
0x1ecb   :  { %v2029_v40 = vpop.permute.xlu1 %2028 }
0x1ecc   :  { %v2031_v41 = vmul.f32 %v3957_v53, %v2029_v40 }
0x1ece   :  { %2033 = vrot.lane.b32.xlu0 %v2031_v41, %s3998_s22  ;;  %v3126_v34 = vsel %vm32_vm0, %v4337_v36, %v2031_v41 }
0x1f40   :  { %v2034_v1 = vpop.permute.xlu0 %2033 }
0x1f41   :  { %3349 = vmatmul.mubr.msk.f32.vlgmr.msra.gmra.mrb[20].mxu1 %vm155_vm3, %v2034_v1  ;;  %3589 = vmatmul.mubr.msk.f32.vlgmr.msra.gmra.mrb[22].mxu0 %vm155_vm3, %v2034_v1 }
0x1f42   :  { %3814 = vmatpush1.bf16.msra.mxu1 %v4305_v47  ;;  %3821 = vmatpush3.bf16.msra.mxu0 %v4373_v22 }
0x1f43   :  { %3816 = vmatprep.subr.bf16.mxu1 %v4321_v54  ;;  %3822 = vmatprep.subr.bf16.mxu0 %v3999_v24 }
0x1f44   :  { %2282 = vmatprep.mubr.f32.mxu1 %v4000_v26  ;;  %3599 = vmatprep.mubr.msk.f32.mxu0 %vm4001_vm2, %v4000_v26 }
0x1f46   :  { %3818 = vmatpush1.bf16.msra.mxu1 %v4333_v32  ;;  %3824 = vmatpush3.bf16.msra.mxu0 %v4379_v23 }
0x1f47   :  { %3826 = vmatprep.subr.bf16.mxu1 %v4303_v46  ;;  %3833 = vmatprep.subr.bf16.mxu0 %v3999_v24 }
0x2014   :  { %v2103_v2 = vpop.f32.mrb[20].mxu1  ;;  %v2174_v3 = vpop.f32.mrb[22].mxu0 }
0x2015   :  { %v2180_v5 = vrot.slane %v2174_v3, 2  ;;  %v2105_v6 = vpop.f32.mrb[21].mxu1  ;;  %v3590_v8 = vpop.f32.mrb[23].mxu0  ;;  %v2178_v12 = vadd.f32 %v2103_v2, %v4356_v63 }
0x2017   :  { %v2182_v7 = vadd.f32 %v2180_v5, %v2105_v6 }
0x2019   :  { %v2183_v11 = vadd.f32 %v2182_v7, %v4404_v50 }
0x201b   :  { %v2185_v10 = vrot.slane %v2183_v11, 6 }
0x201d   :  { %v2187_v13 = vsel %vm32_vm0, %v2178_v12, %v2185_v10 }
0x201e   :  { %v3351_v0 = vmul.f32 -1.442695, %v2187_v13 }
0x2020   :  { %3960 = vpow2.f32 %v3351_v0 }
0x202a   :  { %v3961_v14 = vpop.eup %3960 }
0x202b   :  { %v2191_v15 = vadd.f32 1.0, %v3961_v14 }
0x202d   :  { %3962 = vrcp.f32 %v2191_v15 }
0x2037   :  { %v3963_v16 = vpop.eup %3962 }
0x2038   :  { %v2194_v17 = vmul.f32 2.0, %v3963_v16  ;;  %v2196_v21 = vmul.f32 %v3963_v16, %v2025_v61 }
0x203a   :  { %v3352_v18 = vadd.f32 -1.0, %v2194_v17 }
0x203c   :  { %2198 = vrot.lane.b32.xlu1 %v3352_v18, %s3997_s21 }
0x20ae   :  { %v2199_v19 = vpop.permute.xlu1 %2198 }
0x20af   :  { %v2201_v20 = vmul.f32 %v3963_v16, %v2199_v19 }
0x20b1   :  { %2203 = vrot.lane.b32.xlu0 %v2201_v20, %s3998_s22 }
0x2123   :  { %v2204_v9 = vpop.permute.xlu0 %2203 }
0x2124   :  { %v2206_v25 = vadd.f32 %v2204_v9, %v2196_v21 }
0x2126   :  { %3964 = vtanh.f32 %v2206_v25 }
0x2130   :  { %v3965_v28 = vpop.eup %3964 }
0x2131   :  { %2209 = vrot.lane.b32.xlu1 %v3965_v28, %s3997_s21 }
0x21a3   :  { %v2210_v29 = vpop.permute.xlu1 %2209 }
0x21a4   :  { %v2212_v30 = vmul.f32 %v3963_v16, %v2210_v29 }
0x21a6   :  { %v3115_v33 = vrot.slane %v2212_v30, 6  ;;  %2214 = vrot.lane.b32.xlu0 %v2212_v30, %s3998_s22 }
0x21a8   :  { %v3128_v35 = vsel %vm3127_vm4, %v3126_v34, %v3115_v33 }
0x2218   :  { %v2215_v37 = vpop.permute.xlu0 %2214 }
0x2219   :  { %3353 = vmatmul.mubr.msk.f32.vlgmr.msra.gmra.mrb[22].mxu1 %vm155_vm3, %v2215_v37  ;;  %3600 = vmatmul.mubr.msk.f32.vlgmr.msra.gmra.mrb[24].mxu0 %vm155_vm3, %v2215_v37 }
0x221a   :  { %3828 = vmatpush1.bf16.msra.mxu1 %v4305_v47  ;;  %3835 = vmatpush3.bf16.msra.mxu0 %v4373_v22 }
0x221b   :  { %3830 = vmatprep.subr.bf16.mxu1 %v4321_v54  ;;  %3836 = vmatprep.subr.bf16.mxu0 %v3999_v24 }
0x221c   :  { %2463 = vmatprep.mubr.f32.mxu1 %v4000_v26  ;;  %3610 = vmatprep.mubr.msk.f32.mxu0 %vm4001_vm2, %v4000_v26 }
0x221e   :  { %3832 = vmatpush1.bf16.msra.mxu1 %v4333_v32  ;;  %3838 = vmatpush3.bf16.msra.mxu0 %v4379_v23 }
0x221f   :  { %3840 = vmatprep.subr.bf16.mxu1 %v4303_v46  ;;  %3847 = vmatprep.subr.bf16.mxu0 %v3999_v24 }
0x22ec   :  { %v2284_v36 = vpop.f32.mrb[22].mxu1  ;;  %v2355_v27 = vpop.f32.mrb[24].mxu0 }
0x22ed   :  { %v2361_v38 = vrot.slane %v2355_v27, 2  ;;  %v2286_v39 = vpop.f32.mrb[23].mxu1  ;;  %v3601_v42 = vpop.f32.mrb[25].mxu0  ;;  %v2359_v45 = vadd.f32 %v2284_v36, %v4356_v63 }
0x22ef   :  { %v2363_v43 = vadd.f32 %v2361_v38, %v2286_v39 }
0x22f1   :  { %v2364_v44 = vadd.f32 %v2363_v43, %v4404_v50 }
0x22f3   :  { %v2366_v48 = vrot.slane %v2364_v44, 6 }
0x22f5   :  { %v2368_v49 = vsel %vm32_vm0, %v2359_v45, %v2366_v48 }
0x22f6   :  { %v3355_v4 = vmul.f32 -1.442695, %v2368_v49 }
0x22f8   :  { %3966 = vpow2.f32 %v3355_v4 }
0x2302   :  { %v3967_v51 = vpop.eup %3966 }
0x2303   :  { %v2372_v52 = vadd.f32 1.0, %v3967_v51 }
0x2305   :  { %3968 = vrcp.f32 %v2372_v52 }
0x230f   :  { %v3969_v53 = vpop.eup %3968 }
0x2310   :  { %v2375_v55 = vmul.f32 2.0, %v3969_v53  ;;  %v2377_v58 = vmul.f32 %v3969_v53, %v2206_v25 }
0x2312   :  { %v3356_v31 = vadd.f32 -1.0, %v2375_v55 }
0x2314   :  { %2379 = vrot.lane.b32.xlu1 %v3356_v31, %s3997_s21 }
0x2386   :  { %v2380_v56 = vpop.permute.xlu1 %2379 }
0x2387   :  { %v2382_v57 = vmul.f32 %v3969_v53, %v2380_v56 }
0x2389   :  { %2384 = vrot.lane.b32.xlu0 %v2382_v57, %s3998_s22 }
0x23fb   :  { %v2385_v59 = vpop.permute.xlu0 %2384 }
0x23fc   :  { %v2387_v60 = vadd.f32 %v2385_v59, %v2377_v58 }
0x23fe   :  { %3970 = vtanh.f32 %v2387_v60 }
0x2408   :  { %v3971_v61 = vpop.eup %3970 }
0x2409   :  { %2390 = vrot.lane.b32.xlu1 %v3971_v61, %s3997_s21 }
0x247b   :  { %v2391_v62 = vpop.permute.xlu1 %2390 }
0x247c   :  { %v2393_v40 = vmul.f32 %v3969_v53, %v2391_v62 }
0x247e   :  { %v3117_v41 = vrot.slane %v2393_v40, 4  ;;  %2395 = vrot.lane.b32.xlu0 %v2393_v40, %s3998_s22 }
0x2480   :  { %v4458_v1 = vsel %vm3129_vm5, %v3128_v35, %v3117_v41 }
0x24f0   :  { %v2396_v2 = vpop.permute.xlu0 %2395 }
0x24f1   :  { %3357 = vmatmul.mubr.msk.f32.vlgmr.msra.gmra.mrb[24].mxu1 %vm155_vm3, %v2396_v2  ;;  %3611 = vmatmul.mubr.msk.f32.vlgmr.msra.gmra.mrb[26].mxu0 %vm155_vm3, %v2396_v2 }
0x24f2   :  { %3842 = vmatpush1.bf16.msra.mxu1 %v4305_v47  ;;  %3849 = vmatpush3.bf16.msra.mxu0 %v4373_v22 }
0x24f3   :  { %3844 = vmatprep.subr.bf16.mxu1 %v4321_v54  ;;  %3850 = vmatprep.subr.bf16.mxu0 %v3999_v24 }
0x24f4   :  { %2644 = vmatprep.mubr.f32.mxu1 %v4000_v26  ;;  %3621 = vmatprep.mubr.msk.f32.mxu0 %vm4001_vm2, %v4000_v26 }
0x24f6   :  { %3846 = vmatpush1.bf16.msra.mxu1 %v4333_v32  ;;  %3852 = vmatpush3.bf16.msra.mxu0 %v4379_v23 }
0x24f7   :  { %3854 = vmatprep.subr.bf16.mxu1 %v4303_v46  ;;  %3861 = vmatprep.subr.bf16.mxu0 %v3999_v24 }
0x25c4   :  { %v2465_v3 = vpop.f32.mrb[24].mxu1  ;;  %v2536_v5 = vpop.f32.mrb[26].mxu0 }
0x25c5   :  { %v2542_v6 = vrot.slane %v2536_v5, 2  ;;  %v2467_v8 = vpop.f32.mrb[25].mxu1  ;;  %v3612_v7 = vpop.f32.mrb[27].mxu0  ;;  %v2540_v10 = vadd.f32 %v2465_v3, %v4356_v63 }
0x25c7   :  { %v2544_v11 = vadd.f32 %v2542_v6, %v2467_v8 }
0x25c9   :  { %v2545_v12 = vadd.f32 %v2544_v11, %v4404_v50 }
0x25cb   :  { %v2547_v13 = vrot.slane %v2545_v12, 6 }
0x25cd   :  { %v2549_v0 = vsel %vm32_vm0, %v2540_v10, %v2547_v13 }
0x25ce   :  { %v3359_v14 = vmul.f32 -1.442695, %v2549_v0 }
0x25d0   :  { %3972 = vpow2.f32 %v3359_v14 }
0x25da   :  { %v3973_v15 = vpop.eup %3972 }
0x25db   :  { %v2553_v16 = vadd.f32 1.0, %v3973_v15 }
0x25dd   :  { %3974 = vrcp.f32 %v2553_v16 }
0x25e7   :  { %v3975_v17 = vpop.eup %3974 }
0x25e8   :  { %v2556_v18 = vmul.f32 2.0, %v3975_v17  ;;  %v2558_v9 = vmul.f32 %v3975_v17, %v2387_v60 }
0x25ea   :  { %v3360_v19 = vadd.f32 -1.0, %v2556_v18 }
0x25ec   :  { %2560 = vrot.lane.b32.xlu1 %v3360_v19, %s3997_s21 }
0x265e   :  { %v2561_v20 = vpop.permute.xlu1 %2560 }
0x265f   :  { %v2563_v21 = vmul.f32 %v3975_v17, %v2561_v20 }
0x2661   :  { %2565 = vrot.lane.b32.xlu0 %v2563_v21, %s3998_s22 }
0x26d3   :  { %v2566_v25 = vpop.permute.xlu0 %2565 }
0x26d4   :  { %v2568_v28 = vadd.f32 %v2566_v25, %v2558_v9 }
0x26d6   :  { %3976 = vtanh.f32 %v2568_v28 }
0x26e0   :  { %v3977_v29 = vpop.eup %3976 }
0x26e1   :  { %2571 = vrot.lane.b32.xlu1 %v3977_v29, %s3997_s21 }
0x2753   :  { %v2572_v30 = vpop.permute.xlu1 %2571 }
0x2754   :  { %v2574_v33 = vmul.f32 %v3975_v17, %v2572_v30 }
0x2756   :  { %2576 = vrot.lane.b32.xlu0 %v2574_v33, %s3998_s22  ;;  %v3119_v60 = vrot.slane %v2574_v33, 2 }
0x27c8   :  { %v2577_v34 = vpop.permute.xlu0 %2576 }
0x27c9   :  { %3361 = vmatmul.mubr.msk.f32.vlgmr.msra.gmra.mrb[26].mxu1 %vm155_vm3, %v2577_v34  ;;  %3622 = vmatmul.mubr.msk.f32.vlgmr.msra.gmra.mrb[28].mxu0 %vm155_vm3, %v2577_v34 }
0x27ca   :  { %3856 = vmatpush1.bf16.msra.mxu1 %v4305_v47  ;;  %3863 = vmatpush3.bf16.msra.mxu0 %v4373_v22 }
0x27cb   :  { %3858 = vmatprep.subr.bf16.mxu1 %v4321_v54  ;;  %3864 = vmatprep.subr.bf16.mxu0 %v3999_v24 }
0x27cc   :  { %2825 = vmatprep.mubr.f32.mxu1 %v4000_v26  ;;  %3632 = vmatprep.mubr.msk.f32.mxu0 %vm4001_vm2, %v4000_v26 }
0x27ce   :  { %3860 = vmatpush1.bf16.msra.mxu1 %v4333_v32  ;;  %3866 = vmatpush3.bf16.msra.mxu0 %v4379_v23 }
0x27cf   :  { %3868 = vmatprep.subr.bf16.mxu1 %v4303_v46  ;;  %3875 = vmatprep.subr.bf16.mxu0 %v3999_v24 }
0x289c   :  { %v2646_v35 = vpop.f32.mrb[26].mxu1  ;;  %v2717_v37 = vpop.f32.mrb[28].mxu0 }
0x289d   :  { %v2723_v36 = vrot.slane %v2717_v37, 2  ;;  %v2648_v27 = vpop.f32.mrb[27].mxu1  ;;  %v3623_v38 = vpop.f32.mrb[29].mxu0  ;;  %v2721_v43 = vadd.f32 %v2646_v35, %v4356_v63 }
0x289f   :  { %v2725_v39 = vadd.f32 %v2723_v36, %v2648_v27 }
0x28a1   :  { %v2726_v42 = vadd.f32 %v2725_v39, %v4404_v50 }
0x28a3   :  { %v2728_v44 = vrot.slane %v2726_v42, 6 }
0x28a5   :  { %v2730_v45 = vsel %vm32_vm0, %v2721_v43, %v2728_v44 }
0x28a6   :  { %v3363_v48 = vmul.f32 -1.442695, %v2730_v45 }
0x28a8   :  { %3978 = vpow2.f32 %v3363_v48 }
0x28b2   :  { %v3979_v49 = vpop.eup %3978 }
0x28b3   :  { %v2734_v4 = vadd.f32 1.0, %v3979_v49  ;;  %v3134_v49 = vld [vmem:[%s4567_s3] sm:$0xff] }
0x28b5   :  { %3980 = vrcp.f32 %v2734_v4  ;;  %v3135_v4 = vld [vmem:[%s4567_s3 + $0x8] sm:$0xff] }
0x28bf   :  { %v3981_v46 = vpop.eup %3980 }
0x28c0   :  { %v2737_v51 = vmul.f32 2.0, %v3981_v46  ;;  %v2739_v31 = vmul.f32 %v3981_v46, %v2568_v28 }
0x28c2   :  { %v3364_v52 = vadd.f32 -1.0, %v2737_v51  ;;  %v3137_v51 = vld [vmem:[%s4567_s3 + $0x18] sm:$0xff] }
0x28c4   :  { %2741 = vrot.lane.b32.xlu1 %v3364_v52, %s3997_s21 }
0x2936   :  { %v2742_v53 = vpop.permute.xlu1 %2741 }
0x2937   :  { %v2744_v55 = vmul.f32 %v3981_v46, %v2742_v53 }
0x2939   :  { %2746 = vrot.lane.b32.xlu0 %v2744_v55, %s3998_s22 }
0x29ab   :  { %v2747_v56 = vpop.permute.xlu0 %2746 }
0x29ac   :  { %v2749_v57 = vadd.f32 %v2747_v56, %v2739_v31 }
0x29ae   :  { %3982 = vtanh.f32 %v2749_v57 }
0x29b8   :  { %v3983_v58 = vpop.eup %3982 }
0x29b9   :  { %2752 = vrot.lane.b32.xlu1 %v3983_v58, %s3997_s21 }
0x2a2b   :  { %v2753_v59 = vpop.permute.xlu1 %2752 }
0x2a2c   :  { %v2755_v61 = vmul.f32 %v3981_v46, %v2753_v59  ;;  %v3881_v46 = vpack.c.bf16 %v3135_v4, %v3134_v49  ;;  %v3373_v59 = vld [vmem:[%s4567_s3 + $0x20] ss:$0 sm:$0xff] }
0x2a2e   :  { %v3131_v62 = vsel %vm32_vm0, %v3119_v60, %v2755_v61  ;;  %2757 = vrot.lane.b32.xlu0 %v2755_v61, %s3998_s22  ;;  %v19_v61 = vld [vmem:[%s4565_s0 + $0x10] sm:$0x3] }
0x2aa0   :  { %v2758_v40 = vpop.permute.xlu0 %2757 }
0x2aa1   :  { %3365 = vmatmul.mubr.msk.f32.vlgmr.msra.gmra.mrb[28].mxu1 %vm155_vm3, %v2758_v40  ;;  %3633 = vmatmul.mubr.msk.f32.vlgmr.msra.gmra.mrb[30].mxu0 %vm155_vm3, %v2758_v40 }
0x2aa2   :  { %3870 = vmatpush1.bf16.msra.mxu1 %v4305_v47  ;;  %3877 = vmatpush3.bf16.msra.mxu0 %v4373_v22 }
0x2aa3   :  { %3872 = vmatprep.subr.bf16.mxu1 %v4321_v54  ;;  %3878 = vmatprep.subr.bf16.mxu0 %v3999_v24 }
0x2aa4   :  { %3006 = vmatprep.mubr.f32.mxu1 %v4000_v26  ;;  %3643 = vmatprep.mubr.msk.f32.mxu0 %vm4001_vm2, %v4000_v26 }
0x2aa6   :  { %3874 = vmatpush1.bf16.msra.mxu1 %v4333_v32  ;;  %3880 = vmatpush3.bf16.msra.mxu0 %v4379_v23 }
0x2aa7   :  { %3882 = vmatprep.subr.bf16.mxu1 %v3881_v46 }
0x2b74   :  { %v2827_v41 = vpop.f32.mrb[28].mxu1  ;;  %v2898_v2 = vpop.f32.mrb[30].mxu0 }
0x2b75   :  { %v2904_v3 = vrot.slane %v2898_v2, 2  ;;  %v2829_v5 = vpop.f32.mrb[29].mxu1  ;;  %v3634_v47 = vpop.f32.mrb[31].mxu0  ;;  %v2902_v54 = vadd.f32 %v2827_v41, %v4356_v63 }
0x2b77   :  { %v2906_v6 = vadd.f32 %v2904_v3, %v2829_v5 }
0x2b79   :  { %v2907_v22 = vadd.f32 %v2906_v6, %v4404_v50 }
0x2b7b   :  { %v2909_v24 = vrot.slane %v2907_v22, 6 }
0x2b7d   :  { %v2911_v8 = vsel %vm32_vm0, %v2902_v54, %v2909_v24 }
0x2b7e   :  { %v3367_v7 = vmul.f32 -1.442695, %v2911_v8 }
0x2b80   :  { %3984 = vpow2.f32 %v3367_v7 }
0x2b8a   :  { %v3985_v26 = vpop.eup %3984 }
0x2b8b   :  { %v2915_v11 = vadd.f32 1.0, %v3985_v26 }
0x2b8d   :  { %3986 = vrcp.f32 %v2915_v11 }
0x2b97   :  { %v3987_v32 = vpop.eup %3986 }
0x2b98   :  { %v2918_v23 = vmul.f32 2.0, %v3987_v32  ;;  %v2920_v0 = vmul.f32 %v3987_v32, %v2749_v57 }
0x2b9a   :  { %v3368_v12 = vadd.f32 -1.0, %v2918_v23 }
0x2b9c   :  { %2922 = vrot.lane.b32.xlu1 %v3368_v12, %s3997_s21 }
0x2c0e   :  { %v2923_v10 = vpop.permute.xlu1 %2922 }
0x2c0f   :  { %v2925_v13 = vmul.f32 %v3987_v32, %v2923_v10 }
0x2c11   :  { %2927 = vrot.lane.b32.xlu0 %v2925_v13, %s3998_s22 }
0x2c83   :  { %v2928_v14 = vpop.permute.xlu0 %2927 }
0x2c84   :  { %v2930_v63 = vadd.f32 %v2928_v14, %v2920_v0 }
0x2c86   :  { %3988 = vtanh.f32 %v2930_v63  ;;  %v3096_v43 = vrot.slane %v2930_v63, 2 }
0x2c90   :  { %v3989_v15 = vpop.eup %3988 }
0x2c91   :  { %2933 = vrot.lane.b32.xlu1 %v3989_v15, %s3997_s21 }
0x2d03   :  { %v2934_v16 = vpop.permute.xlu1 %2933 }
0x2d04   :  { %v2936_v17 = vmul.f32 %v3987_v32, %v2934_v16 }
0x2d06   :  { %v3121_v18 = vrot.slane %v2936_v17, 6  ;;  %2938 = vrot.lane.b32.xlu0 %v2936_v17, %s3998_s22 }
0x2d08   :  { %v3132_v19 = vsel %vm3127_vm4, %v3131_v62, %v3121_v18 }
0x2d78   :  { %v2939_v20 = vpop.permute.xlu0 %2938 }
0x2d79   :  { %3369 = vmatmul.mubr.msk.f32.vlgmr.msra.gmra.mrb[30].mxu1 %vm155_vm3, %v2939_v20  ;;  %3644 = vmatmul.mubr.msk.f32.vlgmr.msra.gmra.mrb[32].mxu0 %vm155_vm3, %v2939_v20 }
0x2d7a   :  { %3884 = vmatpush3.bf16.msra.mxu1 %v3881_v46 }
0x2e4c   :  { %v3008_v21 = vpop.f32.mrb[30].mxu1  ;;  %v3078_v9 = vpop.f32.mrb[32].mxu0 }
0x2e4d   :  { %v3083_v25 = vrot.slane %v3078_v9, 2  ;;  %v3009_v28 = vpop.f32.mrb[31].mxu1  ;;  %v3645_v29 = vpop.f32.mrb[33].mxu0 }
0x2e4f   :  { %v3085_v30 = vadd.f32 %v3083_v25, %v3009_v28 }
0x2e51   :  { %v3086_v33 = vadd.f32 %v3085_v30, %v4404_v50 }
0x2e53   :  { %v3371_v34 = vmul.f32 -1.442695, %v3086_v33 }
0x2e55   :  { %3990 = vpow2.f32 %v3371_v34 }
0x2e5f   :  { %v3991_v35 = vpop.eup %3990 }
0x2e60   :  { %v3090_v37 = vadd.f32 1.0, %v3991_v35 }
0x2e62   :  { %3992 = vrcp.f32 %v3090_v37 }
0x2e6c   :  { %v3993_v36 = vpop.eup %3992 }
0x2e6d   :  { %v3093_v27 = vmul.f32 2.0, %v3993_v36  ;;  %v3098_v44 = vmul.f32 %v3993_v36, %v3096_v43 }
0x2e6f   :  { %v3372_v38 = vadd.f32 -1.0, %v3093_v27 }
0x2e71   :  { %3100 = vrot.lane.b32.xlu1 %v3372_v38, %s3997_s21 }
0x2ee3   :  { %v3101_v39 = vpop.permute.xlu1 %3100 }
0x2ee4   :  { %v3103_v42 = vmul.f32 %v3993_v36, %v3101_v39 }
0x2ee6   :  { %3105 = vrot.lane.b32.xlu0 %v3103_v42, %s3998_s22 }
0x2eea   :  { %3145 = vrot.lane.b32.xlu0 %v4458_v1, %s3998_s22  ;;  %v3136_v1 = vld [vmem:[%s4567_s3 + $0x10] sm:$0xff] }
0x2eeb   :  { %v3885_v52 = vpack.c.bf16 %v3137_v51, %v3136_v1 }
0x2eed   :  { %3886 = vmatprep.subr.bf16.mxu1 %v3885_v52 }
0x2eee   :  { %3888 = vmatpush3.bf16.msra.mxu1 %v3885_v52 }
0x2f58   :  { %v3106_v50 = vpop.permute.xlu0 %3105 }
0x2f59   :  { %v3108_v45 = vadd.f32 %v3106_v50, %v3098_v44 }
0x2f5b   :  { %3994 = vtanh.f32 %v3108_v45 }
0x2f5c   :  { %v3146_v48 = vpop.permute.xlu0 %3145 }
0x2f5d   :  { %3654 = vmatprep.mubr.msk.f32.mxu1 %vm155_vm3, %v3146_v48 }
0x2f65   :  { %v3995_v53 = vpop.eup %3994 }
0x2f66   :  { %3111 = vrot.lane.b32.xlu1 %v3995_v53, %s3997_s21 }
0x2fd8   :  { %v3112_v55 = vpop.permute.xlu1 %3111 }
0x2fd9   :  { %v3114_v31 = vmul.f32 %v3993_v36, %v3112_v55 }
0x2fdb   :  { %v3124_v56 = vrot.slane %v3114_v31, 2 }
0x2fdd   :  { %v3133_v57 = vsel %vm3129_vm5, %v3132_v19, %v3124_v56 }
0x2fde   :  { %3147 = vrot.lane.b32.xlu1 %v3133_v57, %s3998_s22 }
0x3050   :  { %v3148_v58 = vpop.permute.xlu1 %3147 }
0x3051   :  { %3655 = vmatmul.mubr.msk.f32.vlgmr.msra.gmra.mrb[32].mxu1 %vm155_vm3, %v3148_v58 }
0x3124   :  { %v3656_v60 = vpop.f32.mrb[32].mxu1 }
0x3125   :  { %v3219_v62 = vpop.f32.mrb[33].mxu1  ;;  %v3225_v47 = vadd.f32 %v3656_v60, %v3373_v59 }
0x3126   :  { %v3220_v40 = vadd.f32 %v3373_v59, %v3219_v62 }
0x3127   :  { %v3241_v26 = vrot.slane %v3225_v47, 2  ;;  %v3244_v12 = vrot.slane %v3225_v47, 4  ;;  %v3247_v0 = vrot.slane %v3225_v47, 6 }
0x3128   :  { %v3228_v41 = vadd.f32 %v3220_v40, %v19_v61  ;;  %v3230_v2 = vrot.slane %v3220_v40, 2  ;;  %v3233_v5 = vrot.slane %v3220_v40, 4  ;;  %v3236_v22 = vrot.slane %v3220_v40, 6 }
0x312a   :  { %v3232_v3 = vadd.f32 %v3230_v2, %v3228_v41 }
0x312c   :  { %v3235_v6 = vadd.f32 %v3233_v5, %v3232_v3  ;;  %v3251_v54 = vrot.slane %v3232_v3, 6 }
0x312e   :  { %v3238_v24 = vadd.f32 %v3236_v22, %v3235_v6  ;;  %v3254_v8 = vrot.slane %v3235_v6, 4  ;;  %v3268_v7 = vsel %vm32_vm0, %v3228_v41, %v3251_v54 }
0x3130   :  { %v3239_v11 = vadd.f32 %v3238_v24, %v3225_v47  ;;  %v3257_v32 = vrot.slane %v3238_v24, 2  ;;  %v3269_v23 = vsel %vm3127_vm4, %v3268_v7, %v3254_v8 }
0x3132   :  { %v3243_v10 = vadd.f32 %v3241_v26, %v3239_v11  ;;  %v3270_v13 = vsel %vm3129_vm5, %v3269_v23, %v3257_v32 }
0x3133   :  { %3274 = vst.msk [vmem:[%s4568_s4] sm:$0xff] %vm25_vm1, %v3270_v13 }
0x3134   :  { %v3246_v14 = vadd.f32 %v3244_v12, %v3243_v10  ;;  %v3260_v63 = vrot.slane %v3243_v10, 6 }
0x3136   :  { %v3249_v15 = vadd.f32 %v3247_v0, %v3246_v14  ;;  %v3263_v16 = vrot.slane %v3246_v14, 4  ;;  %v3271_v17 = vsel %vm32_vm0, %v3239_v11, %v3260_v63 }
0x3138   :  { %v3266_v18 = vrot.slane %v3249_v15, 2  ;;  %v3272_v19 = vsel %vm3127_vm4, %v3271_v17, %v3263_v16 }
0x313a   :  { %v3273_v20 = vsel %vm3129_vm5, %v3272_v19, %v3266_v18 }
0x313b   :  { %3275 = vst.msk [vmem:[%s4568_s4 + $0x8] sm:$0xff] %vm25_vm1, %v3273_v20 }

</bundles_post_ra>
